<compile_context>
chip_gen: v6e
topology: v6e:2x2x1
jax: 0.10.0
libtpu: 0.0.40
codegen_flags: <defaults>
</compile_context>

<pallas_src>
import functools

import jax
import jax.numpy as jnp
from jax.experimental import pallas as pl
from jax.experimental.pallas import tpu as pltpu

# ----------------------------- config --------------------------------------
IMAGE_SIZE = 32
PATCH = 16
WIDTH = 128          # transformer width   (1024 in ViT-L/14) -- one full vreg lane width
HEADS = 4            # attention heads     (16   in ViT-L/14)
DH = WIDTH // HEADS  # 32
LAYERS = 2           # residual blocks     (24   in ViT-L/14)
EMBED_DIM = 768      # visual projection output dim (matches fc input size)
NUM_CLASSES = 1
LANE_OUT = 128       # lane-dense padded width for the logits output
LN_EPS = 1e-5

GRID_TOKENS = (IMAGE_SIZE // PATCH) ** 2   # 4 patch tokens
T = GRID_TOKENS + 1                        # 5 = cls + patches
T_PAD = 8                                  # sublane-aligned token count (padded keys masked)
CPP = 3 * PATCH * PATCH                    # 768 = flattened patch size
SCALE = 1.0 / (DH ** 0.5)
NEG_INF = -1e9


# --------------------------- in-kernel helpers -------------------------------
def _ln(x, g, b):
    # LayerNorm over the last (lane) dim, f32 statistics.
    mu = jnp.mean(x, axis=-1, keepdims=True)
    var = jnp.mean(jnp.square(x - mu), axis=-1, keepdims=True)
    return (x - mu) * jax.lax.rsqrt(var + LN_EPS) * g + b


# --------------------- fully fused CLIP visual kernel ------------------------
def _clip_kernel(patches_ref, pw_ref, base_ref, lpre_g_ref, lpre_b_ref, mask_ref,
                 ln1g_ref, ln1b_ref, qkvw_ref, qkvb_ref, outw_ref, outb_ref,
                 ln2g_ref, ln2b_ref, fcw_ref, fcb_ref, mpw_ref, mpb_ref,
                 lpost_g_ref, lpost_b_ref, headw_ref, headb_ref,
                 out_ref, h_scr):
    # grid = (LAYERS,). h_scr (B*T_PAD, WIDTH) f32 carries the residual stream across layers.
    layer = pl.program_id(0)
    M = patches_ref.shape[0]          # B * T_PAD  (all images' tokens share the MXU M dim)
    B = M // T_PAD

    # ---- fused stem: patch-embed matmul + cls/pos + ln_pre (layer 0 only) ----
    @pl.when(layer == 0)
    def _():
        tok = jnp.dot(patches_ref[...], pw_ref[...],
                      preferred_element_type=jnp.float32)              # (M, WIDTH)
        base = jnp.concatenate([base_ref[...]] * B, axis=0)            # (M, WIDTH)
        h_scr[...] = _ln(tok + base, lpre_g_ref[...], lpre_b_ref[...])

    h = h_scr[...]                    # (M, WIDTH) f32 residual stream
    mask = mask_ref[...]              # (M, M): 0 same-image valid key, -1e9 otherwise

    # ---- multi-head self-attention ----
    y = _ln(h, ln1g_ref[0], ln1b_ref[0]).astype(jnp.bfloat16)
    qkv = (jnp.dot(y, qkvw_ref[0], preferred_element_type=jnp.float32)
           + qkvb_ref[0]).astype(jnp.bfloat16)                         # (M, 3*WIDTH), cast once
    ow = outw_ref[0]                                                   # (WIDTH, WIDTH) bf16
    acc = jnp.zeros((M, WIDTH), jnp.float32)
    for hd in range(HEADS):           # static unroll; heads sliced in registers
        q = qkv[:, hd * DH:(hd + 1) * DH]
        k = qkv[:, WIDTH + hd * DH:WIDTH + (hd + 1) * DH]
        v = qkv[:, 2 * WIDTH + hd * DH:2 * WIDTH + (hd + 1) * DH]
        s = jax.lax.dot_general(q, k, (((1,), (1,)), ((), ())),
                                preferred_element_type=jnp.float32) * SCALE + mask
        s = s - jnp.max(s, axis=-1, keepdims=True)
        p = jnp.exp(s)
        p = p * pl.reciprocal(jnp.sum(p, axis=-1, keepdims=True), approx=True)
        ctx = jnp.dot(p.astype(jnp.bfloat16), v,
                      preferred_element_type=jnp.float32)              # (M, DH)
        # per-head accumulation against a lane-dense out_w slice (no concat, no lane-sparse store)
        acc = acc + jnp.dot(ctx.astype(jnp.bfloat16),
                            ow[hd * DH:(hd + 1) * DH, :],
                            preferred_element_type=jnp.float32)
    h = h + acc + outb_ref[0]

    # ---- MLP with QuickGELU ----
    y = _ln(h, ln2g_ref[0], ln2b_ref[0]).astype(jnp.bfloat16)
    m = jnp.dot(y, fcw_ref[0], preferred_element_type=jnp.float32) + fcb_ref[0]
    m = (m * jax.nn.sigmoid(1.702 * m)).astype(jnp.bfloat16)           # QuickGELU, cast once
    h = h + jnp.dot(m, mpw_ref[0], preferred_element_type=jnp.float32) + mpb_ref[0]

    h_scr[...] = h

    # ---- fused head: pool cls rows -> ln_post -> projection (+ folded fc), last layer only ----
    @pl.when(layer == LAYERS - 1)
    def _():
        pooled = jnp.concatenate(
            [h[b * T_PAD:b * T_PAD + 1, :] for b in range(B)], axis=0)  # (B, WIDTH) cls rows
        yh = _ln(pooled, lpost_g_ref[...], lpost_b_ref[...]).astype(jnp.bfloat16)
        out_ref[...] = (jnp.dot(yh, headw_ref[...], preferred_element_type=jnp.float32)
                        + headb_ref[...])


# --------------------------- parameters (pre-stacked) ------------------------
def init_params(key):
    # Everything the kernel consumes is prepared ONCE here: stacked per-layer weights in bf16,
    # the cls+pos additive base, and the fc-folded / lane-padded logits projection.
    ks = iter(jax.random.split(key, 5 + 4 * LAYERS))

    def nrm(k, shape, scale=0.02):
        return scale * jax.random.normal(k, shape, dtype=jnp.float32)

    patch_w = nrm(next(ks), (CPP, WIDTH))          # conv1 (patch embed, no bias), flattened
    cls = nrm(next(ks), (WIDTH,))
    pos = nrm(next(ks), (T, WIDTH))
    visual_proj = nrm(next(ks), (WIDTH, EMBED_DIM))    # CLIP visual projection (no bias)
    fc_w = nrm(next(ks), (EMBED_DIM, NUM_CLASSES))     # self.fc = Linear(768, num_classes)
    fc_b = jnp.zeros((NUM_CLASSES,), jnp.float32)

    base = jnp.zeros((T_PAD, WIDTH), jnp.float32)
    base = base.at[:T].set(pos)
    base = base.at[0].add(cls)

    qkv_w, out_w, mfc_w, mpj_w = [], [], [], []
    for _ in range(LAYERS):
        qkv_w.append(nrm(next(ks), (WIDTH, 3 * WIDTH)))
        out_w.append(nrm(next(ks), (WIDTH, WIDTH)))
        mfc_w.append(nrm(next(ks), (WIDTH, 4 * WIDTH)))
        mpj_w.append(nrm(next(ks), (4 * WIDTH, WIDTH)))

    ones = lambda n: jnp.ones((LAYERS, 1, n), jnp.float32)
    zeros = lambda n: jnp.zeros((LAYERS, 1, n), jnp.float32)

    # logits path: fold fc into the bias-free visual projection, pad to 128 lanes (lane-dense store)
    logits_w = jnp.zeros((WIDTH, LANE_OUT), jnp.float32)
    logits_w = logits_w.at[:, :NUM_CLASSES].set(visual_proj @ fc_w)
    logits_b = jnp.zeros((1, LANE_OUT), jnp.float32)
    logits_b = logits_b.at[:, :NUM_CLASSES].set(fc_b)

    return {
        "patch_w": patch_w.astype(jnp.bfloat16),
        "base": base,
        "ln_pre_g": jnp.ones((1, WIDTH), jnp.float32),
        "ln_pre_b": jnp.zeros((1, WIDTH), jnp.float32),
        "ln1_g": ones(WIDTH), "ln1_b": zeros(WIDTH),
        "qkv_w": jnp.stack(qkv_w).astype(jnp.bfloat16),
        "qkv_b": zeros(3 * WIDTH),
        "out_w": jnp.stack(out_w).astype(jnp.bfloat16),
        "out_b": zeros(WIDTH),
        "ln2_g": ones(WIDTH), "ln2_b": zeros(WIDTH),
        "mlp_fc_w": jnp.stack(mfc_w).astype(jnp.bfloat16),
        "mlp_fc_b": zeros(4 * WIDTH),
        "mlp_proj_w": jnp.stack(mpj_w).astype(jnp.bfloat16),
        "mlp_proj_b": zeros(WIDTH),
        "ln_post_g": jnp.ones((1, WIDTH), jnp.float32),
        "ln_post_b": jnp.zeros((1, WIDTH), jnp.float32),
        "feat_w": visual_proj.astype(jnp.bfloat16),
        "feat_b": jnp.zeros((1, EMBED_DIM), jnp.float32),
        "logits_w": logits_w.astype(jnp.bfloat16),
        "logits_b": logits_b,
    }


# ----------------------------- forward ---------------------------------------
def clip_model_forward(params, x, return_feature=False):
    # x is NCHW (B, C, H, W) -- same layout as the PyTorch Conv2d patch stem.
    B, C, Himg, Wimg = x.shape
    gh, gw = Himg // PATCH, Wimg // PATCH
    npatch = gh * gw
    M = B * T_PAD

    # --- wrapper-side layout prep only (no heavy compute) --------------------
    p = x.reshape(B, C, gh, PATCH, gw, PATCH)
    p = p.transpose(0, 2, 4, 1, 3, 5).reshape(B, npatch, CPP)
    patches = jnp.zeros((B, T_PAD, CPP), jnp.bfloat16)
    patches = patches.at[:, 1:1 + npatch, :].set(p.astype(jnp.bfloat16))
    patches = patches.reshape(M, CPP)          # batch folded into the matmul M dimension

    # block-diagonal (per-image) + padded-key additive attention mask
    idx = jnp.arange(M)
    same_img = (idx[:, None] // T_PAD) == (idx[None, :] // T_PAD)
    key_valid = (idx[None, :] % T_PAD) < T
    mask = jnp.where(same_img & key_valid, 0.0, NEG_INF).astype(jnp.float32)

    if return_feature:
        head_w, head_b, n_out = params["feat_w"], params["feat_b"], EMBED_DIM
    else:
        head_w, head_b, n_out = params["logits_w"], params["logits_b"], LANE_OUT

    const2 = lambda l: (0, 0)
    layer3 = lambda l: (l, 0, 0)
    W3, W4 = 3 * WIDTH, 4 * WIDTH

    in_specs = [
        pl.BlockSpec((M, CPP), const2),            # patches (used only at layer 0)
        pl.BlockSpec((CPP, WIDTH), const2),        # patch_w
        pl.BlockSpec((T_PAD, WIDTH), const2),      # cls+pos base
        pl.BlockSpec((1, WIDTH), const2),          # ln_pre_g
        pl.BlockSpec((1, WIDTH), const2),          # ln_pre_b
        pl.BlockSpec((M, M), const2),              # attention mask
        pl.BlockSpec((1, 1, WIDTH), layer3),       # ln1_g
        pl.BlockSpec((1, 1, WIDTH), layer3),       # ln1_b
        pl.BlockSpec((1, WIDTH, W3), layer3),      # qkv_w (bf16)
        pl.BlockSpec((1, 1, W3), layer3),          # qkv_b
        pl.BlockSpec((1, WIDTH, WIDTH), layer3),   # out_w (bf16)
        pl.BlockSpec((1, 1, WIDTH), layer3),       # out_b
        pl.BlockSpec((1, 1, WIDTH), layer3),       # ln2_g
        pl.BlockSpec((1, 1, WIDTH), layer3),       # ln2_b
        pl.BlockSpec((1, WIDTH, W4), layer3),      # mlp fc_w (bf16)
        pl.BlockSpec((1, 1, W4), layer3),          # mlp fc_b
        pl.BlockSpec((1, W4, WIDTH), layer3),      # mlp proj_w (bf16)
        pl.BlockSpec((1, 1, WIDTH), layer3),       # mlp proj_b
        pl.BlockSpec((1, WIDTH), const2),          # ln_post_g
        pl.BlockSpec((1, WIDTH), const2),          # ln_post_b
        pl.BlockSpec((WIDTH, n_out), const2),      # head projection (bf16)
        pl.BlockSpec((1, n_out), const2),          # head bias
    ]

    out = pl.pallas_call(
        _clip_kernel,
        out_shape=jax.ShapeDtypeStruct((B, n_out), jnp.float32),
        grid=(LAYERS,),
        in_specs=in_specs,
        out_specs=pl.BlockSpec((B, n_out), const2),
        scratch_shapes=[pltpu.VMEM((M, WIDTH), jnp.float32)],
        compiler_params=pltpu.CompilerParams(dimension_semantics=("arbitrary",)),
    )(patches, params["patch_w"], params["base"],
      params["ln_pre_g"], params["ln_pre_b"], mask,
      params["ln1_g"], params["ln1_b"], params["qkv_w"], params["qkv_b"],
      params["out_w"], params["out_b"], params["ln2_g"], params["ln2_b"],
      params["mlp_fc_w"], params["mlp_fc_b"], params["mlp_proj_w"], params["mlp_proj_b"],
      params["ln_post_g"], params["ln_post_b"], head_w, head_b)

    if return_feature:
        return out
    return out[:, :NUM_CLASSES]


# ------------------------------ main ------------------------------------------
if __name__ == "__main__":
    key = jax.random.PRNGKey(0)
    pkey, xkey = jax.random.split(key)
    params = init_params(pkey)
    x = jax.random.normal(xkey, (2, 3, IMAGE_SIZE, IMAGE_SIZE), dtype=jnp.float32)

    logits_fn = jax.jit(functools.partial(clip_model_forward, return_feature=False))
    out = jax.block_until_ready(logits_fn(params, x))
    assert out.shape == (2, NUM_CLASSES) and out.dtype == jnp.float32
    assert bool(jnp.all(jnp.isfinite(out)))

    feats_fn = jax.jit(functools.partial(clip_model_forward, return_feature=True))
    feats = jax.block_until_ready(feats_fn(params, x))
    assert feats.shape == (2, EMBED_DIM)
    assert bool(jnp.all(jnp.isfinite(feats)))

    print("KERNEL_OK")
</pallas_src>

<mosaic_0001>
module attributes {stable_mosaic.version = 11 : i64} {
  func.func @_clip_kernel(%arg0: i32, %arg1: memref<16x768xbf16, #tpu.memory_space<vmem>>, %arg2: memref<768x128xbf16, #tpu.memory_space<vmem>>, %arg3: memref<8x128xf32, #tpu.memory_space<vmem>>, %arg4: memref<1x128xf32, #tpu.memory_space<vmem>>, %arg5: memref<1x128xf32, #tpu.memory_space<vmem>>, %arg6: memref<16x16xf32, #tpu.memory_space<vmem>>, %arg7: memref<1x1x128xf32, #tpu.memory_space<vmem>>, %arg8: memref<1x1x128xf32, #tpu.memory_space<vmem>>, %arg9: memref<1x128x384xbf16, #tpu.memory_space<vmem>>, %arg10: memref<1x1x384xf32, #tpu.memory_space<vmem>>, %arg11: memref<1x128x128xbf16, #tpu.memory_space<vmem>>, %arg12: memref<1x1x128xf32, #tpu.memory_space<vmem>>, %arg13: memref<1x1x128xf32, #tpu.memory_space<vmem>>, %arg14: memref<1x1x128xf32, #tpu.memory_space<vmem>>, %arg15: memref<1x128x512xbf16, #tpu.memory_space<vmem>>, %arg16: memref<1x1x512xf32, #tpu.memory_space<vmem>>, %arg17: memref<1x512x128xbf16, #tpu.memory_space<vmem>>, %arg18: memref<1x1x128xf32, #tpu.memory_space<vmem>>, %arg19: memref<1x128xf32, #tpu.memory_space<vmem>>, %arg20: memref<1x128xf32, #tpu.memory_space<vmem>>, %arg21: memref<128x128xbf16, #tpu.memory_space<vmem>>, %arg22: memref<1x128xf32, #tpu.memory_space<vmem>>, %arg23: memref<2x128xf32, #tpu.memory_space<vmem>>, %arg24: memref<16x128xf32, #tpu.memory_space<vmem>>) attributes {dimension_semantics = [#tpu.dimension_semantics<arbitrary>], iteration_bounds = array<i64: 2>, scalar_prefetch = 0 : i64, scratch_operands = 1 : i64, tpu.core_type = #tpu.core_type<tc>, window_params = [{pipeline_mode = #tpu.pipeline_mode<synchronous>, transform_indices = @transform_0, window_bounds = array<i64: 16, 768>}, {pipeline_mode = #tpu.pipeline_mode<synchronous>, transform_indices = @transform_1, window_bounds = array<i64: 768, 128>}, {pipeline_mode = #tpu.pipeline_mode<synchronous>, transform_indices = @transform_2, window_bounds = array<i64: 8, 128>}, {pipeline_mode = #tpu.pipeline_mode<synchronous>, transform_indices = @transform_3, window_bounds = array<i64: 1, 128>}, {pipeline_mode = #tpu.pipeline_mode<synchronous>, transform_indices = @transform_4, window_bounds = array<i64: 1, 128>}, {pipeline_mode = #tpu.pipeline_mode<synchronous>, transform_indices = @transform_5, window_bounds = array<i64: 16, 16>}, {transform_indices = @transform_6, window_bounds = array<i64: 1, 1, 128>}, {transform_indices = @transform_7, window_bounds = array<i64: 1, 1, 128>}, {transform_indices = @transform_8, window_bounds = array<i64: 1, 128, 384>}, {transform_indices = @transform_9, window_bounds = array<i64: 1, 1, 384>}, {transform_indices = @transform_10, window_bounds = array<i64: 1, 128, 128>}, {transform_indices = @transform_11, window_bounds = array<i64: 1, 1, 128>}, {transform_indices = @transform_12, window_bounds = array<i64: 1, 1, 128>}, {transform_indices = @transform_13, window_bounds = array<i64: 1, 1, 128>}, {transform_indices = @transform_14, window_bounds = array<i64: 1, 128, 512>}, {transform_indices = @transform_15, window_bounds = array<i64: 1, 1, 512>}, {transform_indices = @transform_16, window_bounds = array<i64: 1, 512, 128>}, {transform_indices = @transform_17, window_bounds = array<i64: 1, 1, 128>}, {pipeline_mode = #tpu.pipeline_mode<synchronous>, transform_indices = @transform_18, window_bounds = array<i64: 1, 128>}, {pipeline_mode = #tpu.pipeline_mode<synchronous>, transform_indices = @transform_19, window_bounds = array<i64: 1, 128>}, {pipeline_mode = #tpu.pipeline_mode<synchronous>, transform_indices = @transform_20, window_bounds = array<i64: 128, 128>}, {pipeline_mode = #tpu.pipeline_mode<synchronous>, transform_indices = @transform_21, window_bounds = array<i64: 1, 128>}, {pipeline_mode = #tpu.pipeline_mode<synchronous>, transform_indices = @transform_22, window_bounds = array<i64: 2, 128>}]} {
    %c0_i32 = arith.constant 0 : i32
    %0 = arith.cmpi eq, %arg0, %c0_i32 : i32
    %1 = arith.extui %0 : i1 to i32
    %c0_i32_0 = arith.constant 0 : i32
    %2 = arith.cmpi ne, %1, %c0_i32_0 : i32
    scf.if %2 {
      %c0_82 = arith.constant 0 : index
      %c0_83 = arith.constant 0 : index
      %195 = vector.load %arg1[%c0_82, %c0_83] : memref<16x768xbf16, #tpu.memory_space<vmem>>, vector<16x768xbf16>
      %c0_84 = arith.constant 0 : index
      %c0_85 = arith.constant 0 : index
      %196 = vector.load %arg2[%c0_84, %c0_85] : memref<768x128xbf16, #tpu.memory_space<vmem>>, vector<768x128xbf16>
      %cst_86 = arith.constant dense<0.000000e+00> : vector<16x128xf32>
      %197 = tpu.matmul %195, %196, %cst_86 {dimension_numbers = #tpu.dot_dimension_numbers<[1], [0], [0], [1], [0, 0, 1, 1], [], []>} : vector<16x768xbf16>, vector<768x128xbf16>, vector<16x128xf32> -> vector<16x128xf32>
      %c0_87 = arith.constant 0 : index
      %c0_88 = arith.constant 0 : index
      %198 = vector.load %arg3[%c0_87, %c0_88] : memref<8x128xf32, #tpu.memory_space<vmem>>, vector<8x128xf32>
      %199 = tpu.concatenate %198, %198 in 0 : vector<8x128xf32>, vector<8x128xf32> -> vector<16x128xf32>
      %200 = arith.addf %197, %199 : vector<16x128xf32>
      %c0_89 = arith.constant 0 : index
      %c0_90 = arith.constant 0 : index
      %201 = vector.load %arg4[%c0_89, %c0_90] : memref<1x128xf32, #tpu.memory_space<vmem>>, vector<1x128xf32>
      %c0_91 = arith.constant 0 : index
      %c0_92 = arith.constant 0 : index
      %202 = vector.load %arg5[%c0_91, %c0_92] : memref<1x128xf32, #tpu.memory_space<vmem>>, vector<1x128xf32>
      %cst_93 = arith.constant dense<0.000000e+00> : vector<16xf32>
      %203 = vector.multi_reduction <add>, %200, %cst_93 [1] : vector<16x128xf32> to vector<16xf32>
      %204 = vector.shape_cast %203 : vector<16xf32> to vector<16x1xf32>
      %cst_94 = arith.constant 1.280000e+02 : f32
      %205 = vector.broadcast %cst_94 : f32 to vector<16x1xf32>
      %206 = arith.divf %204, %205 : vector<16x1xf32>
      %207 = vector.broadcast %206 : vector<16x1xf32> to vector<16x128xf32>
      %208 = arith.subf %200, %207 : vector<16x128xf32>
      %209 = arith.mulf %208, %208 : vector<16x128xf32>
      %cst_95 = arith.constant dense<0.000000e+00> : vector<16xf32>
      %210 = vector.multi_reduction <add>, %209, %cst_95 [1] : vector<16x128xf32> to vector<16xf32>
      %211 = vector.shape_cast %210 : vector<16xf32> to vector<16x1xf32>
      %cst_96 = arith.constant 1.280000e+02 : f32
      %212 = vector.broadcast %cst_96 : f32 to vector<16x1xf32>
      %213 = arith.divf %211, %212 : vector<16x1xf32>
      %214 = vector.broadcast %206 : vector<16x1xf32> to vector<16x128xf32>
      %215 = arith.subf %200, %214 : vector<16x128xf32>
      %cst_97 = arith.constant 9.99999974E-6 : f32
      %216 = vector.broadcast %cst_97 : f32 to vector<16x1xf32>
      %217 = arith.addf %213, %216 : vector<16x1xf32>
      %218 = math.rsqrt %217 : vector<16x1xf32>
      %219 = vector.broadcast %218 : vector<16x1xf32> to vector<16x128xf32>
      %220 = arith.mulf %215, %219 : vector<16x128xf32>
      %221 = vector.broadcast %201 : vector<1x128xf32> to vector<16x128xf32>
      %222 = arith.mulf %220, %221 : vector<16x128xf32>
      %223 = vector.broadcast %202 : vector<1x128xf32> to vector<16x128xf32>
      %224 = arith.addf %222, %223 : vector<16x128xf32>
      %c0_98 = arith.constant 0 : index
      %c0_99 = arith.constant 0 : index
      %225 = vector.load %arg24[%c0_98, %c0_99] : memref<16x128xf32, #tpu.memory_space<vmem>>, vector<16x128xf32>
      tpu.vector_store %arg24[%c0_98, %c0_99], %224 {strides = array<i32>} : memref<16x128xf32, #tpu.memory_space<vmem>>, vector<16x128xf32>,
    } else {
    }
    %c0 = arith.constant 0 : index
    %c0_1 = arith.constant 0 : index
    %3 = vector.load %arg24[%c0, %c0_1] : memref<16x128xf32, #tpu.memory_space<vmem>>, vector<16x128xf32>
    %c0_2 = arith.constant 0 : index
    %c0_3 = arith.constant 0 : index
    %4 = vector.load %arg6[%c0_2, %c0_3] : memref<16x16xf32, #tpu.memory_space<vmem>>, vector<16x16xf32>
    %c0_4 = arith.constant 0 : index
    %c0_5 = arith.constant 0 : index
    %c0_6 = arith.constant 0 : index
    %5 = vector.load %arg7[%c0_4, %c0_5, %c0_6] : memref<1x1x128xf32, #tpu.memory_space<vmem>>, vector<1x1x128xf32>
    %6 = vector.shape_cast %5 : vector<1x1x128xf32> to vector<1x128xf32>
    %c0_7 = arith.constant 0 : index
    %c0_8 = arith.constant 0 : index
    %c0_9 = arith.constant 0 : index
    %7 = vector.load %arg8[%c0_7, %c0_8, %c0_9] : memref<1x1x128xf32, #tpu.memory_space<vmem>>, vector<1x1x128xf32>
    %8 = vector.shape_cast %7 : vector<1x1x128xf32> to vector<1x128xf32>
    %cst = arith.constant dense<0.000000e+00> : vector<16xf32>
    %9 = vector.multi_reduction <add>, %3, %cst [1] : vector<16x128xf32> to vector<16xf32>
    %10 = vector.shape_cast %9 : vector<16xf32> to vector<16x1xf32>
    %cst_10 = arith.constant 1.280000e+02 : f32
    %11 = vector.broadcast %cst_10 : f32 to vector<16x1xf32>
    %12 = arith.divf %10, %11 : vector<16x1xf32>
    %13 = vector.broadcast %12 : vector<16x1xf32> to vector<16x128xf32>
    %14 = arith.subf %3, %13 : vector<16x128xf32>
    %15 = arith.mulf %14, %14 : vector<16x128xf32>
    %cst_11 = arith.constant dense<0.000000e+00> : vector<16xf32>
    %16 = vector.multi_reduction <add>, %15, %cst_11 [1] : vector<16x128xf32> to vector<16xf32>
    %17 = vector.shape_cast %16 : vector<16xf32> to vector<16x1xf32>
    %cst_12 = arith.constant 1.280000e+02 : f32
    %18 = vector.broadcast %cst_12 : f32 to vector<16x1xf32>
    %19 = arith.divf %17, %18 : vector<16x1xf32>
    %20 = vector.broadcast %12 : vector<16x1xf32> to vector<16x128xf32>
    %21 = arith.subf %3, %20 : vector<16x128xf32>
    %cst_13 = arith.constant 9.99999974E-6 : f32
    %22 = vector.broadcast %cst_13 : f32 to vector<16x1xf32>
    %23 = arith.addf %19, %22 : vector<16x1xf32>
    %24 = math.rsqrt %23 : vector<16x1xf32>
    %25 = vector.broadcast %24 : vector<16x1xf32> to vector<16x128xf32>
    %26 = arith.mulf %21, %25 : vector<16x128xf32>
    %27 = vector.broadcast %6 : vector<1x128xf32> to vector<16x128xf32>
    %28 = arith.mulf %26, %27 : vector<16x128xf32>
    %29 = vector.broadcast %8 : vector<1x128xf32> to vector<16x128xf32>
    %30 = arith.addf %28, %29 : vector<16x128xf32>
    %31 = arith.truncf %30 : vector<16x128xf32> to vector<16x128xbf16>
    %c0_14 = arith.constant 0 : index
    %c0_15 = arith.constant 0 : index
    %c0_16 = arith.constant 0 : index
    %32 = vector.load %arg9[%c0_14, %c0_15, %c0_16] : memref<1x128x384xbf16, #tpu.memory_space<vmem>>, vector<1x128x384xbf16>
    %33 = vector.shape_cast %32 : vector<1x128x384xbf16> to vector<128x384xbf16>
    %cst_17 = arith.constant dense<0.000000e+00> : vector<16x384xf32>
    %34 = tpu.matmul %31, %33, %cst_17 {dimension_numbers = #tpu.dot_dimension_numbers<[1], [0], [0], [1], [0, 0, 1, 1], [], []>} : vector<16x128xbf16>, vector<128x384xbf16>, vector<16x384xf32> -> vector<16x384xf32>
    %c0_18 = arith.constant 0 : index
    %c0_19 = arith.constant 0 : index
    %c0_20 = arith.constant 0 : index
    %35 = vector.load %arg10[%c0_18, %c0_19, %c0_20] : memref<1x1x384xf32, #tpu.memory_space<vmem>>, vector<1x1x384xf32>
    %36 = vector.shape_cast %35 : vector<1x1x384xf32> to vector<1x384xf32>
    %37 = vector.broadcast %36 : vector<1x384xf32> to vector<16x384xf32>
    %38 = arith.addf %34, %37 : vector<16x384xf32>
    %39 = arith.truncf %38 : vector<16x384xf32> to vector<16x384xbf16>
    %c0_21 = arith.constant 0 : index
    %c0_22 = arith.constant 0 : index
    %c0_23 = arith.constant 0 : index
    %40 = vector.load %arg11[%c0_21, %c0_22, %c0_23] : memref<1x128x128xbf16, #tpu.memory_space<vmem>>, vector<1x128x128xbf16>
    %41 = vector.shape_cast %40 : vector<1x128x128xbf16> to vector<128x128xbf16>
    %cst_24 = arith.constant 0.000000e+00 : f32
    %42 = vector.broadcast %cst_24 : f32 to vector<16x128xf32>
    %43 = vector.extract_strided_slice %39 {offsets = [0, 0], sizes = [16, 32], strides = [1, 1]} : vector<16x384xbf16> to vector<16x32xbf16>
    %44 = vector.extract_strided_slice %39 {offsets = [0, 128], sizes = [16, 32], strides = [1, 1]} : vector<16x384xbf16> to vector<16x32xbf16>
    %45 = vector.extract_strided_slice %39 {offsets = [0, 256], sizes = [16, 32], strides = [1, 1]} : vector<16x384xbf16> to vector<16x32xbf16>
    %cst_25 = arith.constant dense<0.000000e+00> : vector<16x16xf32>
    %46 = tpu.matmul %43, %44, %cst_25 {dimension_numbers = #tpu.dot_dimension_numbers<[1], [1], [0], [0], [0, 0, 1, 0], [], []>} : vector<16x32xbf16>, vector<16x32xbf16>, vector<16x16xf32> -> vector<16x16xf32>
    %cst_26 = arith.constant 0.176776692 : f32
    %47 = vector.broadcast %cst_26 : f32 to vector<16x16xf32>
    %48 = arith.mulf %46, %47 : vector<16x16xf32>
    %49 = arith.addf %48, %4 : vector<16x16xf32>
    %cst_27 = arith.constant dense<0xFF800000> : vector<16xf32>
    %50 = vector.multi_reduction <maximumf>, %49, %cst_27 [1] : vector<16x16xf32> to vector<16xf32>
    %51 = vector.shape_cast %50 : vector<16xf32> to vector<16x1xf32>
    %52 = vector.broadcast %51 : vector<16x1xf32> to vector<16x16xf32>
    %53 = arith.subf %49, %52 : vector<16x16xf32>
    %54 = math.exp %53 : vector<16x16xf32>
    %cst_28 = arith.constant dense<0.000000e+00> : vector<16xf32>
    %55 = vector.multi_reduction <add>, %54, %cst_28 [1] : vector<16x16xf32> to vector<16xf32>
    %56 = vector.shape_cast %55 : vector<16xf32> to vector<16x1xf32>
    %57 = tpu.reciprocal %56 {approx = true} : vector<16x1xf32> -> vector<16x1xf32>
    %58 = vector.broadcast %57 : vector<16x1xf32> to vector<16x16xf32>
    %59 = arith.mulf %54, %58 : vector<16x16xf32>
    %60 = arith.truncf %59 : vector<16x16xf32> to vector<16x16xbf16>
    %cst_29 = arith.constant dense<0.000000e+00> : vector<16x32xf32>
    %61 = tpu.matmul %60, %45, %cst_29 {dimension_numbers = #tpu.dot_dimension_numbers<[1], [0], [0], [1], [0, 0, 1, 1], [], []>} : vector<16x16xbf16>, vector<16x32xbf16>, vector<16x32xf32> -> vector<16x32xf32>
    %62 = arith.truncf %61 : vector<16x32xf32> to vector<16x32xbf16>
    %63 = vector.extract_strided_slice %41 {offsets = [0, 0], sizes = [32, 128], strides = [1, 1]} : vector<128x128xbf16> to vector<32x128xbf16>
    %cst_30 = arith.constant dense<0.000000e+00> : vector<16x128xf32>
    %64 = tpu.matmul %62, %63, %cst_30 {dimension_numbers = #tpu.dot_dimension_numbers<[1], [0], [0], [1], [0, 0, 1, 1], [], []>} : vector<16x32xbf16>, vector<32x128xbf16>, vector<16x128xf32> -> vector<16x128xf32>
    %65 = arith.addf %42, %64 : vector<16x128xf32>
    %66 = vector.extract_strided_slice %39 {offsets = [0, 32], sizes = [16, 32], strides = [1, 1]} : vector<16x384xbf16> to vector<16x32xbf16>
    %67 = vector.extract_strided_slice %39 {offsets = [0, 160], sizes = [16, 32], strides = [1, 1]} : vector<16x384xbf16> to vector<16x32xbf16>
    %68 = vector.extract_strided_slice %39 {offsets = [0, 288], sizes = [16, 32], strides = [1, 1]} : vector<16x384xbf16> to vector<16x32xbf16>
    %cst_31 = arith.constant dense<0.000000e+00> : vector<16x16xf32>
    %69 = tpu.matmul %66, %67, %cst_31 {dimension_numbers = #tpu.dot_dimension_numbers<[1], [1], [0], [0], [0, 0, 1, 0], [], []>} : vector<16x32xbf16>, vector<16x32xbf16>, vector<16x16xf32> -> vector<16x16xf32>
    %cst_32 = arith.constant 0.176776692 : f32
    %70 = vector.broadcast %cst_32 : f32 to vector<16x16xf32>
    %71 = arith.mulf %69, %70 : vector<16x16xf32>
    %72 = arith.addf %71, %4 : vector<16x16xf32>
    %cst_33 = arith.constant dense<0xFF800000> : vector<16xf32>
    %73 = vector.multi_reduction <maximumf>, %72, %cst_33 [1] : vector<16x16xf32> to vector<16xf32>
    %74 = vector.shape_cast %73 : vector<16xf32> to vector<16x1xf32>
    %75 = vector.broadcast %74 : vector<16x1xf32> to vector<16x16xf32>
    %76 = arith.subf %72, %75 : vector<16x16xf32>
    %77 = math.exp %76 : vector<16x16xf32>
    %cst_34 = arith.constant dense<0.000000e+00> : vector<16xf32>
    %78 = vector.multi_reduction <add>, %77, %cst_34 [1] : vector<16x16xf32> to vector<16xf32>
    %79 = vector.shape_cast %78 : vector<16xf32> to vector<16x1xf32>
    %80 = tpu.reciprocal %79 {approx = true} : vector<16x1xf32> -> vector<16x1xf32>
    %81 = vector.broadcast %80 : vector<16x1xf32> to vector<16x16xf32>
    %82 = arith.mulf %77, %81 : vector<16x16xf32>
    %83 = arith.truncf %82 : vector<16x16xf32> to vector<16x16xbf16>
    %cst_35 = arith.constant dense<0.000000e+00> : vector<16x32xf32>
    %84 = tpu.matmul %83, %68, %cst_35 {dimension_numbers = #tpu.dot_dimension_numbers<[1], [0], [0], [1], [0, 0, 1, 1], [], []>} : vector<16x16xbf16>, vector<16x32xbf16>, vector<16x32xf32> -> vector<16x32xf32>
    %85 = arith.truncf %84 : vector<16x32xf32> to vector<16x32xbf16>
    %86 = vector.extract_strided_slice %41 {offsets = [32, 0], sizes = [32, 128], strides = [1, 1]} : vector<128x128xbf16> to vector<32x128xbf16>
    %cst_36 = arith.constant dense<0.000000e+00> : vector<16x128xf32>
    %87 = tpu.matmul %85, %86, %cst_36 {dimension_numbers = #tpu.dot_dimension_numbers<[1], [0], [0], [1], [0, 0, 1, 1], [], []>} : vector<16x32xbf16>, vector<32x128xbf16>, vector<16x128xf32> -> vector<16x128xf32>
    %88 = arith.addf %65, %87 : vector<16x128xf32>
    %89 = vector.extract_strided_slice %39 {offsets = [0, 64], sizes = [16, 32], strides = [1, 1]} : vector<16x384xbf16> to vector<16x32xbf16>
    %90 = vector.extract_strided_slice %39 {offsets = [0, 192], sizes = [16, 32], strides = [1, 1]} : vector<16x384xbf16> to vector<16x32xbf16>
    %91 = vector.extract_strided_slice %39 {offsets = [0, 320], sizes = [16, 32], strides = [1, 1]} : vector<16x384xbf16> to vector<16x32xbf16>
    %cst_37 = arith.constant dense<0.000000e+00> : vector<16x16xf32>
    %92 = tpu.matmul %89, %90, %cst_37 {dimension_numbers = #tpu.dot_dimension_numbers<[1], [1], [0], [0], [0, 0, 1, 0], [], []>} : vector<16x32xbf16>, vector<16x32xbf16>, vector<16x16xf32> -> vector<16x16xf32>
    %cst_38 = arith.constant 0.176776692 : f32
    %93 = vector.broadcast %cst_38 : f32 to vector<16x16xf32>
    %94 = arith.mulf %92, %93 : vector<16x16xf32>
    %95 = arith.addf %94, %4 : vector<16x16xf32>
    %cst_39 = arith.constant dense<0xFF800000> : vector<16xf32>
    %96 = vector.multi_reduction <maximumf>, %95, %cst_39 [1] : vector<16x16xf32> to vector<16xf32>
    %97 = vector.shape_cast %96 : vector<16xf32> to vector<16x1xf32>
    %98 = vector.broadcast %97 : vector<16x1xf32> to vector<16x16xf32>
    %99 = arith.subf %95, %98 : vector<16x16xf32>
    %100 = math.exp %99 : vector<16x16xf32>
    %cst_40 = arith.constant dense<0.000000e+00> : vector<16xf32>
    %101 = vector.multi_reduction <add>, %100, %cst_40 [1] : vector<16x16xf32> to vector<16xf32>
    %102 = vector.shape_cast %101 : vector<16xf32> to vector<16x1xf32>
    %103 = tpu.reciprocal %102 {approx = true} : vector<16x1xf32> -> vector<16x1xf32>
    %104 = vector.broadcast %103 : vector<16x1xf32> to vector<16x16xf32>
    %105 = arith.mulf %100, %104 : vector<16x16xf32>
    %106 = arith.truncf %105 : vector<16x16xf32> to vector<16x16xbf16>
    %cst_41 = arith.constant dense<0.000000e+00> : vector<16x32xf32>
    %107 = tpu.matmul %106, %91, %cst_41 {dimension_numbers = #tpu.dot_dimension_numbers<[1], [0], [0], [1], [0, 0, 1, 1], [], []>} : vector<16x16xbf16>, vector<16x32xbf16>, vector<16x32xf32> -> vector<16x32xf32>
    %108 = arith.truncf %107 : vector<16x32xf32> to vector<16x32xbf16>
    %109 = vector.extract_strided_slice %41 {offsets = [64, 0], sizes = [32, 128], strides = [1, 1]} : vector<128x128xbf16> to vector<32x128xbf16>
    %cst_42 = arith.constant dense<0.000000e+00> : vector<16x128xf32>
    %110 = tpu.matmul %108, %109, %cst_42 {dimension_numbers = #tpu.dot_dimension_numbers<[1], [0], [0], [1], [0, 0, 1, 1], [], []>} : vector<16x32xbf16>, vector<32x128xbf16>, vector<16x128xf32> -> vector<16x128xf32>
    %111 = arith.addf %88, %110 : vector<16x128xf32>
    %112 = vector.extract_strided_slice %39 {offsets = [0, 96], sizes = [16, 32], strides = [1, 1]} : vector<16x384xbf16> to vector<16x32xbf16>
    %113 = vector.extract_strided_slice %39 {offsets = [0, 224], sizes = [16, 32], strides = [1, 1]} : vector<16x384xbf16> to vector<16x32xbf16>
    %114 = vector.extract_strided_slice %39 {offsets = [0, 352], sizes = [16, 32], strides = [1, 1]} : vector<16x384xbf16> to vector<16x32xbf16>
    %cst_43 = arith.constant dense<0.000000e+00> : vector<16x16xf32>
    %115 = tpu.matmul %112, %113, %cst_43 {dimension_numbers = #tpu.dot_dimension_numbers<[1], [1], [0], [0], [0, 0, 1, 0], [], []>} : vector<16x32xbf16>, vector<16x32xbf16>, vector<16x16xf32> -> vector<16x16xf32>
    %cst_44 = arith.constant 0.176776692 : f32
    %116 = vector.broadcast %cst_44 : f32 to vector<16x16xf32>
    %117 = arith.mulf %115, %116 : vector<16x16xf32>
    %118 = arith.addf %117, %4 : vector<16x16xf32>
    %cst_45 = arith.constant dense<0xFF800000> : vector<16xf32>
    %119 = vector.multi_reduction <maximumf>, %118, %cst_45 [1] : vector<16x16xf32> to vector<16xf32>
    %120 = vector.shape_cast %119 : vector<16xf32> to vector<16x1xf32>
    %121 = vector.broadcast %120 : vector<16x1xf32> to vector<16x16xf32>
    %122 = arith.subf %118, %121 : vector<16x16xf32>
    %123 = math.exp %122 : vector<16x16xf32>
    %cst_46 = arith.constant dense<0.000000e+00> : vector<16xf32>
    %124 = vector.multi_reduction <add>, %123, %cst_46 [1] : vector<16x16xf32> to vector<16xf32>
    %125 = vector.shape_cast %124 : vector<16xf32> to vector<16x1xf32>
    %126 = tpu.reciprocal %125 {approx = true} : vector<16x1xf32> -> vector<16x1xf32>
    %127 = vector.broadcast %126 : vector<16x1xf32> to vector<16x16xf32>
    %128 = arith.mulf %123, %127 : vector<16x16xf32>
    %129 = arith.truncf %128 : vector<16x16xf32> to vector<16x16xbf16>
    %cst_47 = arith.constant dense<0.000000e+00> : vector<16x32xf32>
    %130 = tpu.matmul %129, %114, %cst_47 {dimension_numbers = #tpu.dot_dimension_numbers<[1], [0], [0], [1], [0, 0, 1, 1], [], []>} : vector<16x16xbf16>, vector<16x32xbf16>, vector<16x32xf32> -> vector<16x32xf32>
    %131 = arith.truncf %130 : vector<16x32xf32> to vector<16x32xbf16>
    %132 = vector.extract_strided_slice %41 {offsets = [96, 0], sizes = [32, 128], strides = [1, 1]} : vector<128x128xbf16> to vector<32x128xbf16>
    %cst_48 = arith.constant dense<0.000000e+00> : vector<16x128xf32>
    %133 = tpu.matmul %131, %132, %cst_48 {dimension_numbers = #tpu.dot_dimension_numbers<[1], [0], [0], [1], [0, 0, 1, 1], [], []>} : vector<16x32xbf16>, vector<32x128xbf16>, vector<16x128xf32> -> vector<16x128xf32>
    %134 = arith.addf %111, %133 : vector<16x128xf32>
    %135 = arith.addf %3, %134 : vector<16x128xf32>
    %c0_49 = arith.constant 0 : index
    %c0_50 = arith.constant 0 : index
    %c0_51 = arith.constant 0 : index
    %136 = vector.load %arg12[%c0_49, %c0_50, %c0_51] : memref<1x1x128xf32, #tpu.memory_space<vmem>>, vector<1x1x128xf32>
    %137 = vector.shape_cast %136 : vector<1x1x128xf32> to vector<1x128xf32>
    %138 = vector.broadcast %137 : vector<1x128xf32> to vector<16x128xf32>
    %139 = arith.addf %135, %138 : vector<16x128xf32>
    %c0_52 = arith.constant 0 : index
    %c0_53 = arith.constant 0 : index
    %c0_54 = arith.constant 0 : index
    %140 = vector.load %arg13[%c0_52, %c0_53, %c0_54] : memref<1x1x128xf32, #tpu.memory_space<vmem>>, vector<1x1x128xf32>
    %141 = vector.shape_cast %140 : vector<1x1x128xf32> to vector<1x128xf32>
    %c0_55 = arith.constant 0 : index
    %c0_56 = arith.constant 0 : index
    %c0_57 = arith.constant 0 : index
    %142 = vector.load %arg14[%c0_55, %c0_56, %c0_57] : memref<1x1x128xf32, #tpu.memory_space<vmem>>, vector<1x1x128xf32>
    %143 = vector.shape_cast %142 : vector<1x1x128xf32> to vector<1x128xf32>
    %cst_58 = arith.constant dense<0.000000e+00> : vector<16xf32>
    %144 = vector.multi_reduction <add>, %139, %cst_58 [1] : vector<16x128xf32> to vector<16xf32>
    %145 = vector.shape_cast %144 : vector<16xf32> to vector<16x1xf32>
    %cst_59 = arith.constant 1.280000e+02 : f32
    %146 = vector.broadcast %cst_59 : f32 to vector<16x1xf32>
    %147 = arith.divf %145, %146 : vector<16x1xf32>
    %148 = vector.broadcast %147 : vector<16x1xf32> to vector<16x128xf32>
    %149 = arith.subf %139, %148 : vector<16x128xf32>
    %150 = arith.mulf %149, %149 : vector<16x128xf32>
    %cst_60 = arith.constant dense<0.000000e+00> : vector<16xf32>
    %151 = vector.multi_reduction <add>, %150, %cst_60 [1] : vector<16x128xf32> to vector<16xf32>
    %152 = vector.shape_cast %151 : vector<16xf32> to vector<16x1xf32>
    %cst_61 = arith.constant 1.280000e+02 : f32
    %153 = vector.broadcast %cst_61 : f32 to vector<16x1xf32>
    %154 = arith.divf %152, %153 : vector<16x1xf32>
    %155 = vector.broadcast %147 : vector<16x1xf32> to vector<16x128xf32>
    %156 = arith.subf %139, %155 : vector<16x128xf32>
    %cst_62 = arith.constant 9.99999974E-6 : f32
    %157 = vector.broadcast %cst_62 : f32 to vector<16x1xf32>
    %158 = arith.addf %154, %157 : vector<16x1xf32>
    %159 = math.rsqrt %158 : vector<16x1xf32>
    %160 = vector.broadcast %159 : vector<16x1xf32> to vector<16x128xf32>
    %161 = arith.mulf %156, %160 : vector<16x128xf32>
    %162 = vector.broadcast %141 : vector<1x128xf32> to vector<16x128xf32>
    %163 = arith.mulf %161, %162 : vector<16x128xf32>
    %164 = vector.broadcast %143 : vector<1x128xf32> to vector<16x128xf32>
    %165 = arith.addf %163, %164 : vector<16x128xf32>
    %166 = arith.truncf %165 : vector<16x128xf32> to vector<16x128xbf16>
    %c0_63 = arith.constant 0 : index
    %c0_64 = arith.constant 0 : index
    %c0_65 = arith.constant 0 : index
    %167 = vector.load %arg15[%c0_63, %c0_64, %c0_65] : memref<1x128x512xbf16, #tpu.memory_space<vmem>>, vector<1x128x512xbf16>
    %168 = vector.shape_cast %167 : vector<1x128x512xbf16> to vector<128x512xbf16>
    %cst_66 = arith.constant dense<0.000000e+00> : vector<16x512xf32>
    %169 = tpu.matmul %166, %168, %cst_66 {dimension_numbers = #tpu.dot_dimension_numbers<[1], [0], [0], [1], [0, 0, 1, 1], [], []>} : vector<16x128xbf16>, vector<128x512xbf16>, vector<16x512xf32> -> vector<16x512xf32>
    %c0_67 = arith.constant 0 : index
    %c0_68 = arith.constant 0 : index
    %c0_69 = arith.constant 0 : index
    %170 = vector.load %arg16[%c0_67, %c0_68, %c0_69] : memref<1x1x512xf32, #tpu.memory_space<vmem>>, vector<1x1x512xf32>
    %171 = vector.shape_cast %170 : vector<1x1x512xf32> to vector<1x512xf32>
    %172 = vector.broadcast %171 : vector<1x512xf32> to vector<16x512xf32>
    %173 = arith.addf %169, %172 : vector<16x512xf32>
    %cst_70 = arith.constant 1.702000e+00 : f32
    %174 = vector.broadcast %cst_70 : f32 to vector<16x512xf32>
    %175 = arith.mulf %174, %173 : vector<16x512xf32>
    %176 = arith.negf %175 : vector<16x512xf32>
    %177 = math.exp %176 : vector<16x512xf32>
    %cst_71 = arith.constant 1.000000e+00 : f32
    %178 = vector.broadcast %cst_71 : f32 to vector<16x512xf32>
    %179 = arith.addf %178, %177 : vector<16x512xf32>
    %180 = arith.divf %178, %179 : vector<16x512xf32>
    %181 = arith.mulf %173, %180 : vector<16x512xf32>
    %182 = arith.truncf %181 : vector<16x512xf32> to vector<16x512xbf16>
    %c0_72 = arith.constant 0 : index
    %c0_73 = arith.constant 0 : index
    %c0_74 = arith.constant 0 : index
    %183 = vector.load %arg17[%c0_72, %c0_73, %c0_74] : memref<1x512x128xbf16, #tpu.memory_space<vmem>>, vector<1x512x128xbf16>
    %184 = vector.shape_cast %183 : vector<1x512x128xbf16> to vector<512x128xbf16>
    %cst_75 = arith.constant dense<0.000000e+00> : vector<16x128xf32>
    %185 = tpu.matmul %182, %184, %cst_75 {dimension_numbers = #tpu.dot_dimension_numbers<[1], [0], [0], [1], [0, 0, 1, 1], [], []>} : vector<16x512xbf16>, vector<512x128xbf16>, vector<16x128xf32> -> vector<16x128xf32>
    %186 = arith.addf %139, %185 : vector<16x128xf32>
    %c0_76 = arith.constant 0 : index
    %c0_77 = arith.constant 0 : index
    %c0_78 = arith.constant 0 : index
    %187 = vector.load %arg18[%c0_76, %c0_77, %c0_78] : memref<1x1x128xf32, #tpu.memory_space<vmem>>, vector<1x1x128xf32>
    %188 = vector.shape_cast %187 : vector<1x1x128xf32> to vector<1x128xf32>
    %189 = vector.broadcast %188 : vector<1x128xf32> to vector<16x128xf32>
    %190 = arith.addf %186, %189 : vector<16x128xf32>
    %c0_79 = arith.constant 0 : index
    %c0_80 = arith.constant 0 : index
    %191 = vector.load %arg24[%c0_79, %c0_80] : memref<16x128xf32, #tpu.memory_space<vmem>>, vector<16x128xf32>
    tpu.vector_store %arg24[%c0_79, %c0_80], %190 {strides = array<i32>} : memref<16x128xf32, #tpu.memory_space<vmem>>, vector<16x128xf32>,
    %c1_i32 = arith.constant 1 : i32
    %192 = arith.cmpi eq, %arg0, %c1_i32 : i32
    %193 = arith.extui %192 : i1 to i32
    %c0_i32_81 = arith.constant 0 : i32
    %194 = arith.cmpi ne, %193, %c0_i32_81 : i32
    scf.if %194 {
      %195 = vector.extract_strided_slice %190 {offsets = [0, 0], sizes = [1, 128], strides = [1, 1]} : vector<16x128xf32> to vector<1x128xf32>
      %196 = vector.extract_strided_slice %190 {offsets = [8, 0], sizes = [1, 128], strides = [1, 1]} : vector<16x128xf32> to vector<1x128xf32>
      %197 = tpu.concatenate %195, %196 in 0 : vector<1x128xf32>, vector<1x128xf32> -> vector<2x128xf32>
      %c0_82 = arith.constant 0 : index
      %c0_83 = arith.constant 0 : index
      %198 = vector.load %arg19[%c0_82, %c0_83] : memref<1x128xf32, #tpu.memory_space<vmem>>, vector<1x128xf32>
      %c0_84 = arith.constant 0 : index
      %c0_85 = arith.constant 0 : index
      %199 = vector.load %arg20[%c0_84, %c0_85] : memref<1x128xf32, #tpu.memory_space<vmem>>, vector<1x128xf32>
      %cst_86 = arith.constant dense<0.000000e+00> : vector<2xf32>
      %200 = vector.multi_reduction <add>, %197, %cst_86 [1] : vector<2x128xf32> to vector<2xf32>
      %201 = vector.shape_cast %200 : vector<2xf32> to vector<2x1xf32>
      %cst_87 = arith.constant 1.280000e+02 : f32
      %202 = vector.broadcast %cst_87 : f32 to vector<2x1xf32>
      %203 = arith.divf %201, %202 : vector<2x1xf32>
      %204 = vector.broadcast %203 : vector<2x1xf32> to vector<2x128xf32>
      %205 = arith.subf %197, %204 : vector<2x128xf32>
      %206 = arith.mulf %205, %205 : vector<2x128xf32>
      %cst_88 = arith.constant dense<0.000000e+00> : vector<2xf32>
      %207 = vector.multi_reduction <add>, %206, %cst_88 [1] : vector<2x128xf32> to vector<2xf32>
      %208 = vector.shape_cast %207 : vector<2xf32> to vector<2x1xf32>
      %cst_89 = arith.constant 1.280000e+02 : f32
      %209 = vector.broadcast %cst_89 : f32 to vector<2x1xf32>
      %210 = arith.divf %208, %209 : vector<2x1xf32>
      %211 = vector.broadcast %203 : vector<2x1xf32> to vector<2x128xf32>
      %212 = arith.subf %197, %211 : vector<2x128xf32>
      %cst_90 = arith.constant 9.99999974E-6 : f32
      %213 = vector.broadcast %cst_90 : f32 to vector<2x1xf32>
      %214 = arith.addf %210, %213 : vector<2x1xf32>
      %215 = math.rsqrt %214 : vector<2x1xf32>
      %216 = vector.broadcast %215 : vector<2x1xf32> to vector<2x128xf32>
      %217 = arith.mulf %212, %216 : vector<2x128xf32>
      %218 = vector.broadcast %198 : vector<1x128xf32> to vector<2x128xf32>
      %219 = arith.mulf %217, %218 : vector<2x128xf32>
      %220 = vector.broadcast %199 : vector<1x128xf32> to vector<2x128xf32>
      %221 = arith.addf %219, %220 : vector<2x128xf32>
      %222 = arith.truncf %221 : vector<2x128xf32> to vector<2x128xbf16>
      %c0_91 = arith.constant 0 : index
      %c0_92 = arith.constant 0 : index
      %223 = vector.load %arg21[%c0_91, %c0_92] : memref<128x128xbf16, #tpu.memory_space<vmem>>, vector<128x128xbf16>
      %cst_93 = arith.constant dense<0.000000e+00> : vector<2x128xf32>
      %224 = tpu.matmul %222, %223, %cst_93 {dimension_numbers = #tpu.dot_dimension_numbers<[1], [0], [0], [1], [0, 0, 1, 1], [], []>} : vector<2x128xbf16>, vector<128x128xbf16>, vector<2x128xf32> -> vector<2x128xf32>
      %c0_94 = arith.constant 0 : index
      %c0_95 = arith.constant 0 : index
      %225 = vector.load %arg22[%c0_94, %c0_95] : memref<1x128xf32, #tpu.memory_space<vmem>>, vector<1x128xf32>
      %226 = vector.broadcast %225 : vector<1x128xf32> to vector<2x128xf32>
      %227 = arith.addf %224, %226 : vector<2x128xf32>
      %c0_96 = arith.constant 0 : index
      %c0_97 = arith.constant 0 : index
      %228 = vector.load %arg23[%c0_96, %c0_97] : memref<2x128xf32, #tpu.memory_space<vmem>>, vector<2x128xf32>
      tpu.vector_store %arg23[%c0_96, %c0_97], %227 {strides = array<i32>} : memref<2x128xf32, #tpu.memory_space<vmem>>, vector<2x128xf32>,
    } else {
    }
    return
  }
  func.func @transform_0(%arg0: i32) -> (i32, i32) {
    %c0_i32 = arith.constant 0 : i32
    %c0_i32_0 = arith.constant 0 : i32
    %c0_i32_1 = arith.constant 0 : i32
    return %c0_i32, %c0_i32_0 : i32, i32
  }
  func.func @transform_1(%arg0: i32) -> (i32, i32) {
    %c0_i32 = arith.constant 0 : i32
    %c0_i32_0 = arith.constant 0 : i32
    %c0_i32_1 = arith.constant 0 : i32
    return %c0_i32, %c0_i32_0 : i32, i32
  }
  func.func @transform_2(%arg0: i32) -> (i32, i32) {
    %c0_i32 = arith.constant 0 : i32
    %c0_i32_0 = arith.constant 0 : i32
    %c0_i32_1 = arith.constant 0 : i32
    return %c0_i32, %c0_i32_0 : i32, i32
  }
  func.func @transform_3(%arg0: i32) -> (i32, i32) {
    %c0_i32 = arith.constant 0 : i32
    %c0_i32_0 = arith.constant 0 : i32
    %c0_i32_1 = arith.constant 0 : i32
    return %c0_i32, %c0_i32_0 : i32, i32
  }
  func.func @transform_4(%arg0: i32) -> (i32, i32) {
    %c0_i32 = arith.constant 0 : i32
    %c0_i32_0 = arith.constant 0 : i32
    %c0_i32_1 = arith.constant 0 : i32
    return %c0_i32, %c0_i32_0 : i32, i32
  }
  func.func @transform_5(%arg0: i32) -> (i32, i32) {
    %c0_i32 = arith.constant 0 : i32
    %c0_i32_0 = arith.constant 0 : i32
    %c0_i32_1 = arith.constant 0 : i32
    return %c0_i32, %c0_i32_0 : i32, i32
  }
  func.func @transform_6(%arg0: i32) -> (i32, i32, i32) {
    %c0_i32 = arith.constant 0 : i32
    %c0_i32_0 = arith.constant 0 : i32
    %c0_i32_1 = arith.constant 0 : i32
    return %arg0, %c0_i32, %c0_i32_0 : i32, i32, i32
  }
  func.func @transform_7(%arg0: i32) -> (i32, i32, i32) {
    %c0_i32 = arith.constant 0 : i32
    %c0_i32_0 = arith.constant 0 : i32
    %c0_i32_1 = arith.constant 0 : i32
    return %arg0, %c0_i32, %c0_i32_0 : i32, i32, i32
  }
  func.func @transform_8(%arg0: i32) -> (i32, i32, i32) {
    %c0_i32 = arith.constant 0 : i32
    %c0_i32_0 = arith.constant 0 : i32
    %c0_i32_1 = arith.constant 0 : i32
    return %arg0, %c0_i32, %c0_i32_0 : i32, i32, i32
  }
  func.func @transform_9(%arg0: i32) -> (i32, i32, i32) {
    %c0_i32 = arith.constant 0 : i32
    %c0_i32_0 = arith.constant 0 : i32
    %c0_i32_1 = arith.constant 0 : i32
    return %arg0, %c0_i32, %c0_i32_0 : i32, i32, i32
  }
  func.func @transform_10(%arg0: i32) -> (i32, i32, i32) {
    %c0_i32 = arith.constant 0 : i32
    %c0_i32_0 = arith.constant 0 : i32
    %c0_i32_1 = arith.constant 0 : i32
    return %arg0, %c0_i32, %c0_i32_0 : i32, i32, i32
  }
  func.func @transform_11(%arg0: i32) -> (i32, i32, i32) {
    %c0_i32 = arith.constant 0 : i32
    %c0_i32_0 = arith.constant 0 : i32
    %c0_i32_1 = arith.constant 0 : i32
    return %arg0, %c0_i32, %c0_i32_0 : i32, i32, i32
  }
  func.func @transform_12(%arg0: i32) -> (i32, i32, i32) {
    %c0_i32 = arith.constant 0 : i32
    %c0_i32_0 = arith.constant 0 : i32
    %c0_i32_1 = arith.constant 0 : i32
    return %arg0, %c0_i32, %c0_i32_0 : i32, i32, i32
  }
  func.func @transform_13(%arg0: i32) -> (i32, i32, i32) {
    %c0_i32 = arith.constant 0 : i32
    %c0_i32_0 = arith.constant 0 : i32
    %c0_i32_1 = arith.constant 0 : i32
    return %arg0, %c0_i32, %c0_i32_0 : i32, i32, i32
  }
  func.func @transform_14(%arg0: i32) -> (i32, i32, i32) {
    %c0_i32 = arith.constant 0 : i32
    %c0_i32_0 = arith.constant 0 : i32
    %c0_i32_1 = arith.constant 0 : i32
    return %arg0, %c0_i32, %c0_i32_0 : i32, i32, i32
  }
  func.func @transform_15(%arg0: i32) -> (i32, i32, i32) {
    %c0_i32 = arith.constant 0 : i32
    %c0_i32_0 = arith.constant 0 : i32
    %c0_i32_1 = arith.constant 0 : i32
    return %arg0, %c0_i32, %c0_i32_0 : i32, i32, i32
  }
  func.func @transform_16(%arg0: i32) -> (i32, i32, i32) {
    %c0_i32 = arith.constant 0 : i32
    %c0_i32_0 = arith.constant 0 : i32
    %c0_i32_1 = arith.constant 0 : i32
    return %arg0, %c0_i32, %c0_i32_0 : i32, i32, i32
  }
  func.func @transform_17(%arg0: i32) -> (i32, i32, i32) {
    %c0_i32 = arith.constant 0 : i32
    %c0_i32_0 = arith.constant 0 : i32
    %c0_i32_1 = arith.constant 0 : i32
    return %arg0, %c0_i32, %c0_i32_0 : i32, i32, i32
  }
  func.func @transform_18(%arg0: i32) -> (i32, i32) {
    %c0_i32 = arith.constant 0 : i32
    %c0_i32_0 = arith.constant 0 : i32
    %c0_i32_1 = arith.constant 0 : i32
    return %c0_i32, %c0_i32_0 : i32, i32
  }
  func.func @transform_19(%arg0: i32) -> (i32, i32) {
    %c0_i32 = arith.constant 0 : i32
    %c0_i32_0 = arith.constant 0 : i32
    %c0_i32_1 = arith.constant 0 : i32
    return %c0_i32, %c0_i32_0 : i32, i32
  }
  func.func @transform_20(%arg0: i32) -> (i32, i32) {
    %c0_i32 = arith.constant 0 : i32
    %c0_i32_0 = arith.constant 0 : i32
    %c0_i32_1 = arith.constant 0 : i32
    return %c0_i32, %c0_i32_0 : i32, i32
  }
  func.func @transform_21(%arg0: i32) -> (i32, i32) {
    %c0_i32 = arith.constant 0 : i32
    %c0_i32_0 = arith.constant 0 : i32
    %c0_i32_1 = arith.constant 0 : i32
    return %c0_i32, %c0_i32_0 : i32, i32
  }
  func.func @transform_22(%arg0: i32) -> (i32, i32) {
    %c0_i32 = arith.constant 0 : i32
    %c0_i32_0 = arith.constant 0 : i32
    %c0_i32_1 = arith.constant 0 : i32
    return %c0_i32, %c0_i32_0 : i32, i32
  }
}

</mosaic_0001>

<bundles_post_ra>
// kernel: clip_model_forward.1
= control target key start
LH: loop header
LB: loop body
LE: loop exit
PB: predicated region body
PF: predicated region fallthrough
CT: control target
= control target key end

     0   :  { %s5241_s0 = inlined_call_operand.vmem [shape: bf16[16,768], index: 0, kind: input, shape index: {}]   ;;  %s5242_s1 = inlined_call_operand.hbm [shape: bf16[768,128], index: 1, kind: input, shape index: {}]   ;;  %s5243_s2 = inlined_call_operand.vmem [shape: f32[8,128], index: 2, kind: input, shape index: {}]   ;;  %s5244_s3 = inlined_call_operand.vmem [shape: f32[1,128], index: 3, kind: input, shape index: {}]   ;;  %s5245_s4 = inlined_call_operand.vmem [shape: f32[1,128], index: 4, kind: input, shape index: {}]   ;;  %s5246_s5 = inlined_call_operand.vmem [shape: f32[16,16], index: 5, kind: input, shape index: {}]   ;;  %s5247_s6 = inlined_call_operand.vmem [shape: f32[2,1,128], index: 6, kind: input, shape index: {}]   ;;  %s5248_s7 = inlined_call_operand.vmem [shape: f32[2,1,128], index: 7, kind: input, shape index: {}]   ;;  %s5249_s8 = inlined_call_operand.hbm [shape: bf16[2,128,384], index: 8, kind: input, shape index: {}]   ;;  %s5250_s9 = inlined_call_operand.vmem [shape: f32[2,1,384], index: 9, kind: input, shape index: {}]   ;;  %s5251_s10 = inlined_call_operand.vmem [shape: bf16[2,128,128], index: 10, kind: input, shape index: {}]   ;;  %s5252_s11 = inlined_call_operand.vmem [shape: f32[2,1,128], index: 11, kind: input, shape index: {}]   ;;  %s5253_s12 = inlined_call_operand.vmem [shape: f32[2,1,128], index: 12, kind: input, shape index: {}]   ;;  %s5254_s13 = inlined_call_operand.vmem [shape: f32[2,1,128], index: 13, kind: input, shape index: {}]   ;;  %s5255_s14 = inlined_call_operand.vmem [shape: bf16[2,128,512], index: 14, kind: input, shape index: {}]   ;;  %s5256_s15 = inlined_call_operand.vmem [shape: f32[2,1,512], index: 15, kind: input, shape index: {}]   ;;  %s5257_s16 = inlined_call_operand.vmem [shape: bf16[2,512,128], index: 16, kind: input, shape index: {}]   ;;  %s5258_s17 = inlined_call_operand.vmem [shape: f32[2,1,128], index: 17, kind: input, shape index: {}]   ;;  %s5259_s18 = inlined_call_operand.vmem [shape: f32[1,128], index: 18, kind: input, shape index: {}]   ;;  %s5260_s19 = inlined_call_operand.vmem [shape: f32[1,128], index: 19, kind: input, shape index: {}]   ;;  %s5261_s20 = inlined_call_operand.vmem [shape: bf16[128,128], index: 20, kind: input, shape index: {}]   ;;  %s5262_s21 = inlined_call_operand.vmem [shape: f32[1,128], index: 21, kind: input, shape index: {}]   ;;  %s5263_s22 = inlined_call_operand.vmem [shape: f32[2,128], index: 22, kind: output, shape index: {}]  }
   0x1   :  { %5272 = sst [smem:[#allocation11_spill]] %s5241_s0 }
   0x2   :  { %5273 = sst [smem:[#allocation12_spill]] %s5242_s1 }
   0x3   :  { %5274 = sst [smem:[#allocation13_spill]] %s5243_s2 }
   0x4   :  { %5275 = sst [smem:[#allocation14_spill]] %s5244_s3 }
   0x5   :  { %5276 = sst [smem:[#allocation15_spill]] %s5245_s4 }
   0x6   :  { %5277 = sst [smem:[#allocation16_spill]] %s5246_s5 }
   0x7   :  { %5278 = sst [smem:[#allocation17_spill]] %s5247_s6 }
   0x8   :  { %5279 = sst [smem:[#allocation18_spill]] %s5249_s8 }
   0x9   :  { %5280 = sst [smem:[#allocation19_spill]] %s5251_s10 }
   0xa   :  { %5281 = sst [smem:[#allocation20_spill]] %s5258_s17 }
   0xb   :  { %5282 = sst [smem:[#allocation21_spill]] %s5259_s18 }
   0xc   :  { %5283 = sst [smem:[#allocation22_spill]] %s5260_s19 }
   0xd   :  { %5284 = sst [smem:[#allocation23_spill]] %s5261_s20 }
   0xe   :  { %5285 = sst [smem:[#allocation24_spill]] %s5262_s21 }
   0xf   :  { %5286 = sst [smem:[#allocation25_spill]] %s5263_s22 }
  0x10   :  { %27 = vsyncpa [#allocation4], 0 }
  0x11   :  { %28 = vsyncpa [#allocation6], 0 }
  0x12   :  { %30 = vsyncpa [#allocation6 + $0x1], 0  ;;  %s4658_s3 = smov 0   ;;  %s4660_s28 = smov 0  }
  0x13   :  { %s4662_s29 = smov 0   ;;  %s4664_s30 = smov 0  }
  0x14 LB: > { %s4677_s4 = sadd.s32 4294967295, %s4527_s30   ;;  %p234_p0 = scmp.ne.s32.totalorder %s4519_s28, %s4515_s3  ;;  %s4527_s30 = sphi %s4664_s30, %s5321_s30   ;;  %s4523_s29 = sphi %s4662_s29, %s5325_s29   ;;  %s4519_s28 = sphi %s4660_s28, %s5324_s28   ;;  %s4515_s3 = sphi %s4658_s3, %s5323_s3  }
  0x15   : > { %p5269_p1 = scmp.eq.s32.totalorder %s4677_s4, 0  ;;  %p3619_p2 = scmp.ge.s32.totalorder %s4527_s30, 1 }
  0x16   : > { %p584_p3 = scmp.lt.s32.totalorder %s4527_s30, 3  ;;  %s4529_s1 = smov [#allocation3]  }
  0x17   : > { %p4686_p5 = por %p5269_p1, %p234_p0  ;;  %s599_s5 = sshll.u32 %s4529_s1, 4  ;;  %s600_s5 = int_to_ptr.vmem [resolvable:$true] %s599_s5 }
  0x18   : > { %p4690_p6 = pnand %p3619_p2, %p584_p3  ;;  %s4703_s6 = sadd.s32 1, %s4527_s30  }
  0x19   : > { %s5287_s0 = scalar_select %p4686_p5, 1, 0 }
  0x1a   : > { %s5288_s23 = scalar_select %p4690_p6, 1, 0 }
  0x1b   : > { %p4114_p7 = pneg %p4690_p6  ;;  %5290 = sst [smem:[#allocation9_spill]] %s4703_s6 }
  0x1c   : > { %s221_s25 = sadd.s32 1, %s4523_s29  ;;  %s218_s26 = ssub.s32 %s4527_s30, %s4703_s6 }
  0x1d   : > { %p4698_p8 = pnand %p4114_p7, %p5269_p1  ;;  %s4446_s2 = scalar_lea.vmem %s600_s5, 6144 }
  0x1e   : > { %p4447_p10 = scmp.ne.s32.totalorder %s600_s5, %s4446_s2  ;;  %p4454_p13 = scmp.lt.s32.totalorder %s600_s5, %s600_s5 }
  0x1f   : > { %p4437_p9 = pneg %p4698_p8  ;;  %p4455_p0 = scmp.lt.s32.totalorder %s4446_s2, %s4446_s2 }
  0x21   : > { %p4449_p11 = pnand %p4447_p10, %p4437_p9  ;;  %p4456_p2 = por %p4455_p0, %p4454_p13 }
  0x23   : > { %p4450_p12 = pneg %p4449_p11 }
  0x25   : > { %p4457_p3 = pnand %p4456_p2, %p4450_p12 }
  0x27   : > { %4460 = shalt.err (!%p4457_p3)
}
  0x28   : > { %s4530_s27 = smov 64   ;;  %s4531_s3 = smov 4  }
  0x29   : > { %s5291_s22 = sld [smem:[#allocation12_spill]]  ;;  %p219_p7 = scmp.eq.s32.totalorder %s218_s26, 0 }
  0x2a   : > { %p228_p9 = scmp.ne.s32.totalorder %s4523_s29, %s4519_s28  ;;  %p229_p10 = scmp.eq.s32.totalorder %s4527_s30, 0 }
  0x2b   : > { %p4123_p11 = scmp.lt.s32.totalorder %s4527_s30, 2  ;;  %s649_s21 = sand.u32 1, %s4523_s29  }
  0x2c   : > { %s4720_s2 = scalar_select %p219_p7, %s4523_s29, %s221_s25  }
  0x2d   : > { %p230_p12 = por %p229_p10, %p228_p9  ;;  %s4104_s19 = smul.u32 192, %s649_s21 }
  0x2e   : > { %5292 = sst [smem:[#allocation10_spill]] %s4720_s2  ;;  %s4105_s18 = smul.u32 3072, %s4527_s30 }
  0x2f   : > { %4117 = dma.hbm_to_vmem [thread:$0]  (!%p4698_p8), %s5291_s22, 6144, %s600_s5, [#allocation4], %s4530_s27, %s4530_s27, %s4531_s3  }
  0x30   : > { %p4724_p13 = pnand %p4123_p11, %p230_p12  ;;  %s5294_s8 = sld [smem:[#allocation18_spill]] }
  0x31   : > { %s653_s22 = scalar_lea.vmem [#allocation5], %s4104_s19  ;;  %s4735_s25 = scalar_lea.sflag [#allocation6], %s649_s21 }
  0x32   : > { %s660_s5 = sshll.u32 %s653_s22, 4  ;;  %p4463_p0 = pneg %p4724_p13  ;;  %s4733_s5 = int_to_ptr.vmem [resolvable:$true] %s660_s5 }
  0x36   : > { %s4731_s6 = scalar_lea.hbm %s5294_s8, %s4105_s18  ;;  %s4466_s18 = scalar_lea.hbm %s5294_s8, 6144 }
  0x37   : > { %s4461_s30 = scalar_lea.hbm %s4731_s6, 3072  ;;  %p4467_p7 = scmp.lt.s32.totalorder %s4731_s6, %s5294_s8 }
  0x38   : > { %p4462_p8 = scmp.ne.s32.totalorder %s4731_s6, %s4461_s30  ;;  %p4468_p9 = scmp.lt.s32.totalorder %s4466_s18, %s4461_s30 }
  0x3a   : > { %p4464_p2 = pnand %p4463_p0, %p4462_p8  ;;  %p4469_p10 = por %p4468_p9, %p4467_p7 }
  0x3c   : > { %p4465_p3 = pneg %p4464_p2 }
  0x3e   : > { %p4470_p11 = pnand %p4469_p10, %p4465_p3 }
  0x40   : > { %4473 = shalt.err (!%p4470_p11)
}
  0x41   : > { %s4474_s19 = scalar_lea.vmem %s4733_s5, 3072  ;;  %s4532_s21 = smov [#allocation5]  }
  0x42   : > { %p4475_p12 = scmp.ne.s32.totalorder %s4733_s5, %s4474_s19  ;;  %s4479_s1 = sshll.u32 %s4532_s21, 4  ;;  %s4480_s1 = int_to_ptr.vmem [resolvable:$false] %s4479_s1 }
  0x43   : > { %s4481_s24 = scalar_lea.vmem %s4480_s1, 6144  ;;  %p4482_p2 = scmp.lt.s32.totalorder %s4733_s5, %s4480_s1 }
  0x44   : > { %p4477_p4 = pnand %p4475_p12, %p4463_p0  ;;  %p4483_p1 = scmp.lt.s32.totalorder %s4481_s24, %s4474_s19 }
  0x46   : > { %p4478_p8 = pneg %p4477_p4  ;;  %p4484_p5 = por %p4483_p1, %p4482_p2 }
  0x48   : > { %p4485_p6 = pnand %p4484_p5, %p4478_p8 }
  0x4a   : > { %4488 = shalt.err (!%p4485_p6)
}
  0x4b   : > { %s4533_s22 = smov 192   ;;  %s4534_s30 = smov 12  }
  0x4c   : > { %4121 = dma.hbm_to_vmem [thread:$0]  (!%p4724_p13), %s4731_s6, 3072, %s4733_s5, %s4735_s25, %s4533_s22, %s4533_s22, %s4534_s30  }
  0x4d   : > { %p5295_p0 = scmp.ne.s32.totalorder %s5288_s23, 0 }
  0x4e   : > { %p5296_p4 = scmp.eq.s32.totalorder (!%p5295_p0), %s4677_s4, 0 }
  0x4f   : > { %734 = sbr.rel (%p5295_p0) target bundleno = 4751 (0x128f), region = 108 }
  0x54   : > { %4506 = dma.done.wait (%p5296_p4), [#allocation4], 6144   ;;  %p5297_p3 = pmov %p5296_p4 }
  0x55   : > { %s740_s26 = sand.u32 1, %s4519_s28   ;;  %p5298_p1 = scmp.ne.s32.totalorder %s5287_s0, 0 }
  0x56   : > { %4508 = vsyncadd (%p5297_p3), [#allocation4], 4294961152  ;;  %s4106_s17 = smul.u32 192, %s740_s26  ;;  %s741_s18 = scalar_lea.sflag [#allocation6], %s740_s26 }
  0x58   : > { %s4763_s27 = scalar_lea.vmem [#allocation5], %s4106_s17 }
  0x59   : > { %4510 = dma.done.wait (%p5298_p1), %s741_s18, 3072  }
  0x5a   : > { %4512 = vsyncadd (%p5298_p1), %s741_s18, 4294964224  ;;  %p841_p5 = scmp.lt.s32.totalorder %s4677_s4, 1  ;;  %s5300_s10 = sld [smem:[#allocation19_spill]] }
  0x5b   : > { %s5301_s3 = sld [smem:[#allocation20_spill]]  ;;  %p5302_p6 = scmp.ne.s32.totalorder %s4677_s4, 0 }
  0x5c   : > { %s4771_s20 = scalar_select %p841_p5, %s4677_s4, 1 }
  0x5d   : > { %s5304_s17 = sld [smem:[#allocation13_spill]] (!%p5302_p6) }
  0x5e   : > { %s4107_s21 = smul.u32 3, %s4771_s20  ;;  %s3825_s1 = sshll.u32 %s4771_s20, 6 }
  0x5f   : > { %s861_s25 = scalar_lea.vmem %s5253_s12, %s4771_s20  ;;  %s3826_s24 = sshll.u32 %s4771_s20, 8 }
  0x60   : > { %s4786_s30 = scalar_lea.vmem %s5300_s10, %s3825_s1  ;;  %s4795_s8 = scalar_lea.vmem %s5250_s9, %s4107_s21 }
  0x61   : > { %s4809_s10 = scalar_lea.vmem %s5255_s14, %s3826_s24  ;;  %s3629_s26 = sshll.u32 %s4771_s20, 2 }
  0x62   : > { %s4815_s21 = scalar_lea.vmem %s5256_s15, %s3629_s26  ;;  %s4820_s0 = scalar_lea.vmem %s5257_s16, %s3826_s24 }
  0x63   : > { %s881_s2 = scalar_lea.vmem %s5301_s3, %s4771_s20  ;;  %886 = sbr.rel (%p5302_p6) target bundleno = 679 (0x2a7), region = 120 }
  0x64   : > { %s5303_s1 = sld [smem:[#allocation11_spill]] (!%p5302_p6) }
  0x65   : > { %s5305_s5 = sld [smem:[#allocation14_spill]] (!%p5302_p6) }
  0x66   : > { %s5306_s18 = sld [smem:[#allocation15_spill]] (!%p5302_p6) }
  0x68   : > { %v4170_v0 = vld [vmem:[#allocation3 + $0x78] sm:$0xff]   ;;  %v4174_v4 = vld [vmem:[#allocation3 + $0x70] sm:$0xff]   ;;  %v4178_v8 = vld [vmem:[#allocation3 + $0x68] sm:$0xff]  }
  0x69   : > { %v4171_v1 = vld [vmem:[#allocation3 + $0x38] sm:$0xff]   ;;  %3828 = vmatprep.subr.bf16.mxu0 %v4170_v0  ;;  %v4175_v5 = vld [vmem:[#allocation3 + $0x30] sm:$0xff]   ;;  %v4179_v9 = vld [vmem:[#allocation3 + $0x28] sm:$0xff]  }
  0x6a   : > { %v4172_v2 = vld [vmem:[#allocation3 + $0xf8] sm:$0xff]   ;;  %3829 = vmatpush3.bf16.msra.mxu0 %v4171_v1  ;;  %v4176_v6 = vld [vmem:[#allocation3 + $0xf0] sm:$0xff]   ;;  %v4180_v10 = vld [vmem:[#allocation3 + $0xe8] sm:$0xff]  }
  0x6b   : > { %v4173_v3 = vld [vmem:[#allocation3 + $0xb8] sm:$0xff]   ;;  %3850 = vmatprep.subr.bf16.mxu1 %v4172_v2  ;;  %3830 = vmatprep.subr.bf16.mxu0 %v4174_v4  ;;  %v4177_v7 = vld [vmem:[#allocation3 + $0xb0] sm:$0xff]   ;;  %v4181_v11 = vld [vmem:[#allocation3 + $0xa8] sm:$0xff]  }
  0x6c   : > { %3851 = vmatpush3.bf16.msra.mxu1 %v4173_v3  ;;  %v4182_v12 = vld [vmem:[#allocation3 + $0x60] sm:$0xff]   ;;  %v4186_v16 = vld [vmem:[#allocation3 + $0x58] sm:$0xff]   ;;  %v4190_v20 = vld [vmem:[#allocation3 + $0x50] sm:$0xff]  }
  0x6d   : > { %3852 = vmatprep.subr.bf16.mxu1 %v4176_v6  ;;  %v4183_v13 = vld [vmem:[#allocation3 + $0x20] sm:$0xff]   ;;  %v4187_v17 = vld [vmem:[#allocation3 + $0x18] sm:$0xff]   ;;  %v4191_v21 = vld [vmem:[#allocation3 + $0x10] sm:$0xff]  }
  0x6e   : > { %3831 = vmatpush3.bf16.msra.mxu0 %v4175_v5  ;;  %v4184_v14 = vld [vmem:[#allocation3 + $0xe0] sm:$0xff]   ;;  %v4188_v18 = vld [vmem:[#allocation3 + $0xd8] sm:$0xff]   ;;  %v4192_v22 = vld [vmem:[#allocation3 + $0xd0] sm:$0xff]  }
  0x6f   : > { %3832 = vmatprep.subr.bf16.mxu0 %v4178_v8  ;;  %v4185_v15 = vld [vmem:[#allocation3 + $0xa0] sm:$0xff]   ;;  %v4189_v19 = vld [vmem:[#allocation3 + $0x98] sm:$0xff]   ;;  %v4193_v23 = vld [vmem:[#allocation3 + $0x90] sm:$0xff]  }
  0x70   : > { %3853 = vmatpush3.bf16.msra.mxu1 %v4177_v7  ;;  %v4194_v24 = vld [vmem:[#allocation3 + $0x48] sm:$0xff]   ;;  %v4198_v28 = vld [vmem:[#allocation3 + $0x40] sm:$0xff]   ;;  %v4205_v34 = vld [vmem:[#allocation3 + $0x178] sm:$0xff]  }
  0x71   : > { %3854 = vmatprep.subr.bf16.mxu1 %v4180_v10  ;;  %v4195_v25 = vld [vmem:[#allocation3 + $0x8] sm:$0xff]   ;;  %v4199_v29 = vld [vmem:[#allocation3] sm:$0xff]   ;;  %v4206_v35 = vld [vmem:[%s5303_s1 + $0x8] ss:$24 sps:$4 sm:$0xff]  }
  0x72   : > { %3833 = vmatpush3.bf16.msra.mxu0 %v4179_v9  ;;  %v4196_v26 = vld [vmem:[#allocation3 + $0xc8] sm:$0xff]   ;;  %v4200_v30 = vld [vmem:[#allocation3 + $0xc0] sm:$0xff]   ;;  %v4208_v36 = vld [vmem:[%s5303_s1 + $0xc] ss:$24 sps:$4 sm:$0xff]  }
  0x73   : > { %3834 = vmatprep.subr.bf16.mxu0 %v4182_v12  ;;  %v4197_v27 = vld [vmem:[#allocation3 + $0x88] sm:$0xff]   ;;  %v4204_v33 = vld [vmem:[#allocation3 + $0x80] sm:$0xff]   ;;  %v4209_v37 = vld [vmem:[#allocation3 + $0x138] sm:$0xff]   ;;  %1381 = vmatprep.mubr.bf16.mxu1 %v4208_v36 }
  0x74   : > { %3855 = vmatpush3.bf16.msra.mxu1 %v4181_v11  ;;  %v4201_v31 = vld [vmem:[%s5303_s1] ss:$24 sps:$4 sm:$0xff]   ;;  %v4203_v32 = vld [vmem:[%s5303_s1 + $0x4] ss:$24 sps:$4 sm:$0xff]   ;;  %v4214_v42 = vld [vmem:[#allocation3 + $0x160] sm:$0xff]  }
  0x75   : > { %3856 = vmatprep.subr.bf16.mxu1 %v4184_v14  ;;  %1340 = vmatprep.mubr.bf16.mxu0 %v4203_v32  ;;  %v4210_v38 = vld [vmem:[#allocation3 + $0x170] sm:$0xff]   ;;  %v4212_v40 = vld [vmem:[#allocation3 + $0x168] sm:$0xff]   ;;  %v4215_v43 = vld [vmem:[#allocation3 + $0x120] sm:$0xff]  }
  0x76   : > { %3835 = vmatpush3.bf16.msra.mxu0 %v4183_v13  ;;  %v4211_v39 = vld [vmem:[#allocation3 + $0x130] sm:$0xff]   ;;  %v4213_v41 = vld [vmem:[#allocation3 + $0x128] sm:$0xff]   ;;  %v4216_v44 = vld [vmem:[#allocation3 + $0x158] sm:$0xff]  }
  0x77   : > { %3836 = vmatprep.subr.bf16.mxu0 %v4186_v16  ;;  %v4217_v45 = vld [vmem:[#allocation3 + $0x118] sm:$0xff]   ;;  %v4218_v46 = vld [vmem:[#allocation3 + $0x150] sm:$0xff]   ;;  %v4220_v49 = vld [vmem:[#allocation3 + $0x148] sm:$0xff]  }
  0x78   : > { %3857 = vmatpush3.bf16.msra.mxu1 %v4185_v15  ;;  %v4226_v47 = vld [vmem:[%s5303_s1 + $0x14] ss:$24 sps:$4 sm:$0xff]   ;;  %v4219_v48 = vld [vmem:[#allocation3 + $0x110] sm:$0xff]   ;;  %v4221_v50 = vld [vmem:[#allocation3 + $0x108] sm:$0xff]  }
  0x79   : > { %3858 = vmatprep.subr.bf16.mxu1 %v4188_v18  ;;  %v4222_v51 = vld [vmem:[#allocation3 + $0x140] sm:$0xff]   ;;  %v989_v60 = vld [vmem:[%s5304_s17] sm:$0xff] }
  0x7a   : > { %3837 = vmatpush3.bf16.msra.mxu0 %v4187_v17  ;;  %v4223_v52 = vld [vmem:[#allocation3 + $0x100] sm:$0xff]   ;;  %v3688_v32 = vld [vmem:[%s5306_s18] ss:$0 sm:$0xff] }
  0x7b   : > { %3838 = vmatprep.subr.bf16.mxu0 %v4190_v20  ;;  %v4224_v53 = vld [vmem:[%s5303_s1 + $0x10] ss:$24 sps:$4 sm:$0xff]  }
  0x7c   : > { %3859 = vmatpush3.bf16.msra.mxu1 %v4189_v19 }
  0x7d   : > { %3860 = vmatprep.subr.bf16.mxu1 %v4192_v22 }
  0x7e   : > { %3839 = vmatpush3.bf16.msra.mxu0 %v4191_v21 }
  0x7f   : > { %3840 = vmatprep.subr.bf16.mxu0 %v4194_v24 }
  0x80   : > { %3861 = vmatpush3.bf16.msra.mxu1 %v4193_v23 }
  0x81   : > { %3862 = vmatprep.subr.bf16.mxu1 %v4196_v26 }
  0x82   : > { %3841 = vmatpush3.bf16.msra.mxu0 %v4195_v25 }
  0x83   : > { %3842 = vmatprep.subr.bf16.mxu0 %v4198_v28 }
  0x84   : > { %3863 = vmatpush3.bf16.msra.mxu1 %v4197_v27 }
  0x85   : > { %3864 = vmatprep.subr.bf16.mxu1 %v4200_v30  ;;  %v3687_v30 = vld [vmem:[%s5305_s5] ss:$0 sm:$0xff] }
  0x86   : > { %3843 = vmatpush3.bf16.msra.mxu0 %v4199_v29 }
  0x87   : > { %3872 = vmatprep.subr.bf16.mxu0 %v4205_v34 }
  0x88   : > { %3865 = vmatpush3.bf16.msra.mxu1 %v4204_v33 }
  0x89   : > { %1341 = vmatmul.mubr.bf16.vlgmr.msra.gmra.mxu0 %v4201_v31 }
  0x8a   : > { %3873 = vmatpush3.bf16.msra.mxu0 %v4209_v37  ;;  %1422 = vmatprep.mubr.bf16.mxu0 %v4226_v47 }
  0x8b   : > { %1382 = vmatmul.mubr.bf16.vlgmr.msra.gmra.mxu1 %v4206_v35  ;;  %3874 = vmatprep.subr.bf16.mxu0 %v4210_v38 }
  0x8e   : > { %3875 = vmatpush3.bf16.msra.mxu0 %v4211_v39 }
  0x8f   : > { %3876 = vmatprep.subr.bf16.mxu0 %v4212_v40 }
  0x92   : > { %3877 = vmatpush3.bf16.msra.mxu0 %v4213_v41 }
  0x93   : > { %3878 = vmatprep.subr.bf16.mxu0 %v4214_v42 }
  0x96   : > { %3879 = vmatpush3.bf16.msra.mxu0 %v4215_v43 }
  0x97   : > { %3880 = vmatprep.subr.bf16.mxu0 %v4216_v44 }
  0x9a   : > { %3881 = vmatpush3.bf16.msra.mxu0 %v4217_v45 }
  0x9b   : > { %3882 = vmatprep.subr.bf16.mxu0 %v4218_v46 }
  0x9e   : > { %3883 = vmatpush3.bf16.msra.mxu0 %v4219_v48 }
  0x9f   : > { %3884 = vmatprep.subr.bf16.mxu0 %v4220_v49 }
  0xa2   : > { %3885 = vmatpush3.bf16.msra.mxu0 %v4221_v50 }
  0xa3   : > { %3886 = vmatprep.subr.bf16.mxu0 %v4222_v51 }
  0xa6   : > { %3887 = vmatpush3.bf16.msra.mxu0 %v4223_v52 }
  0xa9   : > { %1423 = vmatmul.mubr.bf16.vlgmr.msra.gmra.mxu0 %v4224_v53 }
 0x149   : > { %v3844_v54 = vpop.f32.mrf.mxu0 }
 0x14b   : > { %v3845_v55 = vpop.f32.mrf.mxu0  ;;  %v3866_v56 = vpop.f32.mrf.mxu1 }
 0x14c   : > { %v3846_v59 = vadd.f32 %v3845_v55, %v3844_v54 }
 0x14d   : > { %v3847_v57 = vpop.f32.mrf.mxu0  ;;  %v3867_v58 = vpop.f32.mrf.mxu1 }
 0x14e   : > { %v1343_v63 = vadd.f32 %v3846_v59, %v989_v60  ;;  %v3868_v0 = vadd.f32 %v3867_v58, %v3866_v56 }
 0x14f   : > { %v3848_v61 = vpop.f32.mrf.mxu0  ;;  %v3869_v62 = vpop.f32.mrf.mxu1 }
 0x150   : > { %v3849_v1 = vadd.f32 %v3848_v61, %v3847_v57  ;;  %v1384_v5 = vadd.f32 %v3868_v0, %v1343_v63 }
 0x151   : > { %v3870_v2 = vpop.f32.mrf.mxu1 }
 0x152   : > { %v1346_v6 = vadd.f32 %v3849_v1, %v989_v60  ;;  %v3871_v7 = vadd.f32 %v3870_v2, %v3869_v62 }
 0x154   : > { %v1387_v12 = vadd.f32 %v3871_v7, %v1346_v6 }
 0x169   : > { %v3888_v3 = vpop.f32.mrf.mxu0 }
 0x16b   : > { %v3889_v4 = vpop.f32.mrf.mxu0 }
 0x16c   : > { %v3890_v8 = vadd.f32 %v3889_v4, %v3888_v3 }
 0x16d   : > { %v3891_v9 = vpop.f32.mrf.mxu0 }
 0x16e   : > { %v1425_v10 = vadd.f32 %v3890_v8, %v1384_v5 }
 0x16f   : > { %v3892_v11 = vpop.f32.mrf.mxu0 }
 0x170   : > { %v3893_v13 = vadd.f32 %v3892_v11, %v3891_v9  ;;  %1433 = vadd.xlane.f32.xlu0 %v1425_v10 }
 0x172   : > { %v1428_v14 = vadd.f32 %v3893_v13, %v1387_v12 }
 0x174   : > { %1435 = vadd.xlane.f32.xlu0 %v1428_v14 }
 0x1f9   : > { %v1434_v15 = vpop.xlane.xlu0 %1433 }
 0x1fa   : > { %v1438_v16 = vmul.f32 0.0078125, %v1434_v15 }
 0x1fc   : > { %v1440_v17 = vsub.f32 %v1425_v10, %v1438_v16 }
 0x1fd   : > { %v1436_v18 = vpop.xlane.xlu0 %1435 }
 0x1fe   : > { %v1439_v19 = vmul.f32 0.0078125, %v1436_v18  ;;  %v1442_v20 = vmul.f32 %v1440_v17, %v1440_v17 }
 0x200   : > { %v1441_v21 = vsub.f32 %v1428_v14, %v1439_v19  ;;  %1444 = vadd.xlane.f32.xlu1 %v1442_v20 }
 0x202   : > { %v1443_v22 = vmul.f32 %v1441_v21, %v1441_v21 }
 0x204   : > { %1446 = vadd.xlane.f32.xlu1 %v1443_v22 }
 0x289   : > { %v1445_v23 = vpop.xlane.xlu1 %1444 }
 0x28a   : > { %v1448_v24 = vmul.f32 0.0078125, %v1445_v23 }
 0x28c   : > { %v1450_v25 = vadd.f32 1e-05, %v1448_v24 }
 0x28d   : > { %v1447_v26 = vpop.xlane.xlu1 %1446 }
 0x28e   : > { %4227 = vrsqrt.f32 %v1450_v25  ;;  %v1449_v27 = vmul.f32 0.0078125, %v1447_v26 }
 0x290   : > { %v1451_v28 = vadd.f32 1e-05, %v1449_v27 }
 0x292   : > { %4229 = vrsqrt.f32 %v1451_v28 }
 0x29b   : > { %v4228_v29 = vpop.eup %4227 }
 0x29c   : > { %v1454_v31 = vmul.f32 %v4228_v29, %v1440_v17 }
 0x29e   : > { %v1462_v33 = vmul.f32 %v3687_v30, %v1454_v31 }
 0x29f   : > { %v4230_v34 = vpop.eup %4229 }
 0x2a0   : > { %v1470_v35 = vadd.f32 %v3688_v32, %v1462_v33  ;;  %v1455_v36 = vmul.f32 %v4230_v34, %v1441_v21 }
 0x2a2   : > { %1472 = vst [vmem:[#allocation2] sm:$0xff] %v1470_v35  ;;  %v1463_v37 = vmul.f32 %v3687_v30, %v1455_v36 }
 0x2a4   : > { %v1471_v38 = vadd.f32 %v3688_v32, %v1463_v37 }
 0x2a6   : > { %1473 = vst [vmem:[#allocation2 + $0x8] sm:$0xff] %v1471_v38 }
 0x2a7 PF: > { %v4231_v41 = vld [vmem:[%s4763_s27 + $0xac] ss:$12 sps:$4 sm:$0xff]   ;;  %v4233_v42 = vld [vmem:[%s4763_s27 + $0xa8] ss:$12 sps:$4 sm:$0xff]   ;;  %v4535_v43 = vmov 0.0   ;;  %v4536_v2 = vmov 0   ;;  %s5309_s6 = scalar_lea.vmem %s5248_s7, %s4771_s20  ;;  %v1554_v28 = vlaneseq  ;;  %s5313_s19 = scalar_lea.vmem %s5254_s13, %s4771_s20 }
 0x2a8   : > { %3984 = vmatprep.subr.bf16.mxu1 %v4535_v43  ;;  %v4234_v44 = vld [vmem:[%s4763_s27 + $0xb0] ss:$12 sps:$4 sm:$0xff]   ;;  %1697 = vmatprep.subr.bf16.mxu0 %v4231_v41  ;;  %v4235_v53 = vld [vmem:[%s4763_s27 + $0x94] ss:$12 sps:$4 sm:$0xff]   ;;  %v4238_v55 = vld [vmem:[%s4763_s27 + $0x98] ss:$12 sps:$4 sm:$0xff]  }
 0x2a9   : > { %v1474_v39 = vld [vmem:[#allocation2] sm:$0xff]  ;;  %1698 = vmatpush1.bf16.msra.mxu0 %v4233_v42  ;;  %3985 = vmatpush3.bf16.msra.mxu1 %v4234_v44  ;;  %v4239_v56 = vld [vmem:[%s4763_s27 + $0x7c] ss:$12 sps:$4 sm:$0xff]   ;;  %v4241_v57 = vld [vmem:[%s4763_s27 + $0x78] ss:$12 sps:$4 sm:$0xff]   ;;  %vm4537_vm0 = vmmov 0  }
 0x2aa   : > { %1480 = vadd.xlane.f32.xlu0 %v1474_v39  ;;  %3986 = vmatprep.subr.bf16.mxu1 %v4535_v43  ;;  %v4237_v54 = vld [vmem:[%s4763_s27 + $0x90] ss:$12 sps:$4 sm:$0xff]   ;;  %v4242_v58 = vld [vmem:[%s4763_s27 + $0x80] ss:$12 sps:$4 sm:$0xff]   ;;  %v4246_v61 = vld [vmem:[%s4763_s27 + $0x68] ss:$12 sps:$4 sm:$0xff]  }
 0x2ab   : > { %1699 = vmatprep.subr.bf16.mxu0 %v4235_v53  ;;  %v4243_v59 = vld [vmem:[%s4763_s27 + $0x64] ss:$12 sps:$4 sm:$0xff]   ;;  %v4245_v60 = vld [vmem:[%s4763_s27 + $0x60] ss:$12 sps:$4 sm:$0xff]   ;;  %v4249_v63 = vld [vmem:[%s4763_s27 + $0x48] ss:$12 sps:$4 sm:$0xff]   ;;  %1729 = vmatprep.mubr.bf16.mxu0 %v4536_v2 }
 0x2ac   : > { %v4247_v62 = vld [vmem:[%s4763_s27 + $0x4c] ss:$12 sps:$4 sm:$0xff]   ;;  %v4250_v0 = vld [vmem:[%s4763_s27 + $0x50] ss:$12 sps:$4 sm:$0xff]   ;;  %v4251_v1 = vld [vmem:[%s4763_s27 + $0x34] ss:$12 sps:$4 sm:$0xff]   ;;  %4000 = vmatprep.mubr.msk.bf16.mxu1 %vm4537_vm0, %v4535_v43 }
 0x2ad   : > { %v1475_v40 = vld [vmem:[#allocation2 + $0x8] sm:$0xff]  ;;  %1700 = vmatpush1.bf16.msra.mxu0 %v4237_v54  ;;  %3987 = vmatpush3.bf16.msra.mxu1 %v4238_v55  ;;  %v4258_v7 = vld [vmem:[%s4763_s27 + $0x20] ss:$12 sps:$4 sm:$0xff]   ;;  %v4259_v8 = vld [vmem:[%s4763_s27 + $0x4] ss:$12 sps:$4 sm:$0xff]   ;;  %s5307_s22 = sld [smem:[#allocation17_spill]] }
 0x2ae   : > { %1482 = vadd.xlane.f32.xlu0 %v1475_v40  ;;  %3988 = vmatprep.subr.bf16.mxu1 %v4535_v43  ;;  %v4253_v3 = vld [vmem:[%s4763_s27 + $0x30] ss:$12 sps:$4 sm:$0xff]   ;;  %v4254_v4 = vld [vmem:[%s4763_s27 + $0x38] ss:$12 sps:$4 sm:$0xff]   ;;  %v4261_v9 = vld [vmem:[%s4763_s27] ss:$12 sps:$4 sm:$0xff]  }
 0x2af   : > { %1701 = vmatprep.subr.bf16.mxu0 %v4239_v56  ;;  %v4255_v5 = vld [vmem:[%s4763_s27 + $0x1c] ss:$12 sps:$4 sm:$0xff]   ;;  %v4257_v6 = vld [vmem:[%s4763_s27 + $0x18] ss:$12 sps:$4 sm:$0xff]   ;;  %v3690_v23 = vld [vmem:[%s5309_s6] ss:$0 sm:$0xff] }
 0x2b0   : > { %v4262_v10 = vld [vmem:[%s4763_s27 + $0x8] ss:$12 sps:$4 sm:$0xff]   ;;  %v4916_v29 = vshrl.u32 %v1554_v28, 7  ;;  %v1552_v32 = vld [vmem:[%s4795_s8] sm:$0x7]  ;;  %vm1800_vm1 = vcmask 261120  }
 0x2b1   : > { %1702 = vmatpush1.bf16.msra.mxu0 %v4241_v57  ;;  %3989 = vmatpush3.bf16.msra.mxu1 %v4242_v58  ;;  %s4538_s8 = smov 96   ;;  %s5310_s3 = sld [smem:[#allocation16_spill]]  ;;  %vm1852_vm2 = vcmask 130048  }
 0x2b2   : > { %3990 = vmatprep.subr.bf16.mxu1 %v4535_v43  ;;  %1703 = vmatprep.subr.bf16.mxu0 %v4243_v59  ;;  %v1556_v30 = vsub.s32 0, %v4916_v29  ;;  %v1564_v31 = vsub.s32 2, %v4916_v29  ;;  %v1560_v33 = vsub.s32 1, %v4916_v29  ;;  %p3811_p13 = scmp.ne.s32.totalorder %s4677_s4, 1 }
 0x2b3   : > { %s5308_s26 = scalar_lea.vmem %s5307_s22, %s4771_s20  ;;  %s4539_s22 = smov 64  }
 0x2b4   : > { %v3689_v19 = vld [vmem:[%s5308_s26] ss:$0 sm:$0xff]  ;;  %v1557_v36 = vrot.slane %v1552_v32, %v1556_v30  ;;  %v1565_v37 = vrot.slane %v1552_v32, %v1564_v31  ;;  %s4540_s26 = smov 32   ;;  %s5319_s17 = sld [smem:[#allocation24_spill]] (!%p3811_p13) }
 0x2b5   : > { %1704 = vmatpush1.bf16.msra.mxu0 %v4245_v60  ;;  %3991 = vmatpush3.bf16.msra.mxu1 %v4246_v61 }
 0x2b6   : > { %1705 = vmatprep.subr.bf16.mxu0 %v4247_v62  ;;  %3992 = vmatprep.subr.bf16.mxu1 %v4535_v43 }
 0x2b7   : > { %s5311_s18 = smov %s5310_s3  ;;  %v4955_v60 = vld [vmem:[%s5310_s3] sm:$0xff]  ;;  %s5315_s3 = sld [smem:[#allocation23_spill]] (!%p3811_p13) }
 0x2b9   : > { %1706 = vmatpush1.bf16.msra.mxu0 %v4249_v63  ;;  %3993 = vmatpush3.bf16.msra.mxu1 %v4250_v0 }
 0x2ba   : > { %1707 = vmatprep.subr.bf16.mxu0 %v4251_v1  ;;  %3994 = vmatprep.subr.bf16.mxu1 %v4535_v43  ;;  %v4961_v1 = vld [vmem:[%s5311_s18 + $0x8] sm:$0xff] }
 0x2bd   : > { %1708 = vmatpush1.bf16.msra.mxu0 %v4253_v3  ;;  %3995 = vmatpush3.bf16.msra.mxu1 %v4254_v4  ;;  %s5316_s27 = smov (!%p3811_p13), %s5315_s3 }
 0x2be   : > { %1709 = vmatprep.subr.bf16.mxu0 %v4255_v5  ;;  %3996 = vmatprep.subr.bf16.mxu1 %v4535_v43 }
 0x2c1   : > { %1710 = vmatpush1.bf16.msra.mxu0 %v4257_v6  ;;  %3997 = vmatpush3.bf16.msra.mxu1 %v4258_v7 }
 0x2c2   : > { %1711 = vmatprep.subr.bf16.mxu0 %v4259_v8  ;;  %3998 = vmatprep.subr.bf16.mxu1 %v4535_v43 }
 0x2c5   : > { %1712 = vmatpush1.bf16.msra.mxu0 %v4261_v9  ;;  %3999 = vmatpush3.bf16.msra.mxu1 %v4262_v10 }
 0x2c6   : > { %4010 = vmatprep.subr.bf16.mxu1 %v4535_v43  ;;  %4004 = vmatprep.subr.bf16.mxu0 %v4535_v43 }
 0x333   : > { %v1481_v45 = vpop.xlane.xlu0 %1480 }
 0x334   : > { %v1485_v46 = vmul.f32 0.0078125, %v1481_v45 }
 0x336   : > { %v4860_v47 = vsub.f32 %v1474_v39, %v1485_v46 }
 0x337   : > { %v1483_v48 = vpop.xlane.xlu0 %1482 }
 0x338   : > { %v1486_v49 = vmul.f32 0.0078125, %v1483_v48  ;;  %v1489_v50 = vmul.f32 %v4860_v47, %v4860_v47 }
 0x33a   : > { %v4864_v51 = vsub.f32 %v1475_v40, %v1486_v49  ;;  %1491 = vadd.xlane.f32.xlu1 %v1489_v50  ;;  %v1561_v40 = vrot.slane %v1552_v32, %v1560_v33 }
 0x33c   : > { %v1490_v52 = vmul.f32 %v4864_v51, %v4864_v51 }
 0x33e   : > { %1493 = vadd.xlane.f32.xlu1 %v1490_v52 }
 0x3c3   : > { %v1492_v11 = vpop.xlane.xlu1 %1491 }
 0x3c4   : > { %v1495_v12 = vmul.f32 0.0078125, %v1492_v11 }
 0x3c6   : > { %v1497_v13 = vadd.f32 1e-05, %v1495_v12 }
 0x3c7   : > { %v1494_v14 = vpop.xlane.xlu1 %1493 }
 0x3c8   : > { %4351 = vrsqrt.f32 %v1497_v13  ;;  %v1496_v15 = vmul.f32 0.0078125, %v1494_v14 }
 0x3ca   : > { %v1498_v16 = vadd.f32 1e-05, %v1496_v15 }
 0x3cc   : > { %4353 = vrsqrt.f32 %v1498_v16 }
 0x3d5   : > { %v4352_v17 = vpop.eup %4351 }
 0x3d6   : > { %v1501_v18 = vmul.f32 %v4352_v17, %v4860_v47 }
 0x3d8   : > { %v1509_v22 = vmul.f32 %v3689_v19, %v1501_v18 }
 0x3d9   : > { %v4354_v20 = vpop.eup %4353 }
 0x3da   : > { %v1502_v21 = vmul.f32 %v4354_v20, %v4864_v51  ;;  %v1517_v25 = vadd.f32 %v3690_v23, %v1509_v22 }
 0x3dc   : > { %v1510_v24 = vmul.f32 %v3689_v19, %v1502_v21 }
 0x3de   : > { %v1518_v26 = vadd.f32 %v3690_v23, %v1510_v24 }
 0x3e0   : > { %v1519_v27 = vpack.c.bf16 %v1518_v26, %v1517_v25 }
 0x3e2   : > { %1730 = vmatmul.mubr.bf16.vlgmr.msra.gmra.mxu0 %v1519_v27  ;;  %4001 = vmatmul.mubr.bf16.vlgmr.msra.gmra.mxu1 %v1519_v27 }
 0x3e3   : > { %4006 = vmatprep.mubr.msk.bf16.mxu0 %vm4537_vm0, %v4535_v43  ;;  %4012 = vmatprep.mubr.msk.bf16.mxu1 %vm4537_vm0, %v4535_v43 }
 0x4a2   : > { %v1731_v34 = vpop.f32.mrf.mxu0  ;;  %v1774_v35 = vpop.f32.mrf.mxu1 }
 0x4a3   : > { %v1732_v44 = vadd.f32 %v1731_v34, %v1557_v36  ;;  %v1775_v45 = vadd.f32 %v1774_v35, %v1565_v37 }
 0x4a4   : > { %v1733_v38 = vpop.f32.mrf.mxu0  ;;  %v4002_v39 = vpop.f32.mrf.mxu1 }
 0x4a5   : > { %v1734_v50 = vadd.f32 %v1733_v38, %v1561_v40 }
 0x4a6   : > { %v1735_v41 = vpop.f32.mrf.mxu0  ;;  %v1777_v42 = vpop.f32.mrf.mxu1 }
 0x4a7   : > { %v1736_v46 = vadd.f32 %v1735_v41, %v1557_v36  ;;  %v1778_v47 = vadd.f32 %v1777_v42, %v1565_v37 }
 0x4a8   : > { %v1737_v48 = vpop.f32.mrf.mxu0  ;;  %v4003_v49 = vpop.f32.mrf.mxu1 }
 0x4a9   : > { %v4928_v51 = vpack.c.bf16 %v1736_v46, %v1732_v44  ;;  %v4930_v52 = vpack.c.bf16 %v1778_v47, %v1775_v45  ;;  %v1738_v53 = vadd.f32 %v1737_v48, %v1561_v40 }
 0x4ab   : > { %v4932_v54 = vpack.c.bf16 %v1738_v53, %v1734_v50  ;;  %4011 = vmatpush3.bf16.msra.mxu1 %v4930_v52  ;;  %1922 = vrot.lane.b32.xlu1 %v4928_v51, %s4538_s8  ;;  %v4265_v50 = vld [vmem:[%s4786_s30 + $0x18] sm:$0xff]  }
 0x4ac   : > { %4022 = vmatprep.subr.bf16.mxu1 %v4535_v43 }
 0x4ad   : > { %1925 = vrot.lane.b32.xlu0 %v4932_v54, %s4538_s8  ;;  %v1805_v55 = vsel %vm1800_vm1, %v4932_v54, 0 }
 0x4ae   : > { %4005 = vmatpush3.bf16.xpose.msra.mxu0 %v1805_v55 }
 0x4af   : > { %4016 = vmatprep.subr.bf16.mxu0 %v4535_v43 }
 0x4b5   : > { %4007 = vmatmul.mubr.msk.bf16.vlgmr.msra.gmra.mxu0 %vm1800_vm1, %v4928_v51 }
 0x4b6   : > { %4018 = vmatprep.mubr.msk.bf16.mxu0 %vm4537_vm0, %v4535_v43 }
 0x51d   : > { %v1923_v58 = vpop.permute.xlu1 %1922 }
 0x51f   : > { %v1926_v56 = vpop.permute.xlu0 %1925 }
 0x520   : > { %v1931_v57 = vsel %vm1800_vm1, %v1926_v56, 0 }
 0x521   : > { %4017 = vmatpush3.bf16.xpose.msra.mxu0 %v1931_v57 }
 0x522   : > { %4028 = vmatprep.subr.bf16.mxu0 %v4535_v43 }
 0x528   : > { %4019 = vmatmul.mubr.msk.bf16.vlgmr.msra.gmra.mxu0 %vm1800_vm1, %v1923_v58 }
 0x529   : > { %4032 = vmatprep.mubr.msk.bf16.mxu0 %vm4537_vm0, %v4535_v43  ;;  %4029 = vmatpush3.bf16.msra.mxu0 %v4265_v50 }
 0x52a   : > { %4030 = vmatprep.subr.bf16.mxu0 %v4535_v43 }
 0x575   : > { %v1841_v59 = vpop.f32.mrf.mxu0 }
 0x576   : > { %v1848_v61 = vmul.f32 0.17677669, %v1841_v59 }
 0x577   : > { %v4008_v62 = vpop.f32.mrf.mxu0 }
 0x578   : > { %v1850_v63 = vadd.f32 %v1848_v61, %v4955_v60  ;;  %v4263_v62 = vld [vmem:[%s4786_s30 + $0x8] sm:$0xff]  }
 0x579   : > { %v1844_v0 = vpop.f32.mrf.mxu0 }
 0x57a   : > { %v1849_v3 = vmul.f32 0.17677669, %v1844_v0  ;;  %v1853_v4 = vsel %vm1852_vm2, %v1850_v63, -inf  ;;  %v4264_v0 = vld [vmem:[%s4786_s30] sm:$0xff]  }
 0x57b   : > { %1854 = vmax.xlane.f32.xlu1 %v1853_v4  ;;  %v4009_v5 = vpop.f32.mrf.mxu0 }
 0x57c   : > { %v1851_v6 = vadd.f32 %v1849_v3, %v4961_v1  ;;  %v4266_v3 = vld [vmem:[%s4786_s30 + $0x10] sm:$0xff]  }
 0x57d   : > { %4031 = vmatpush3.bf16.msra.mxu0 %v4266_v3 }
 0x57e   : > { %v1856_v7 = vsel %vm1852_vm2, %v1851_v6, -inf  ;;  %4044 = vmatprep.subr.bf16.mxu0 %v4535_v43 }
 0x57f   : > { %1857 = vmax.xlane.f32.xlu0 %v1856_v7 }
 0x5e8   : > { %v1967_v8 = vpop.f32.mrf.mxu0 }
 0x5e9   : > { %v1974_v9 = vmul.f32 0.17677669, %v1967_v8 }
 0x5ea   : > { %v4020_v10 = vpop.f32.mrf.mxu0 }
 0x5eb   : > { %v1976_v11 = vadd.f32 %v1974_v9, %v4955_v60 }
 0x5ec   : > { %v1970_v12 = vpop.f32.mrf.mxu0 }
 0x5ed   : > { %v1975_v13 = vmul.f32 0.17677669, %v1970_v12  ;;  %v1978_v14 = vsel %vm1852_vm2, %v1976_v11, -inf }
 0x5ee   : > { %1979 = vmax.xlane.f32.xlu0 %v1978_v14  ;;  %v4021_v15 = vpop.f32.mrf.mxu0 }
 0x5ef   : > { %v1977_v16 = vadd.f32 %v1975_v13, %v4961_v1 }
 0x5f1   : > { %v1981_v17 = vsel %vm1852_vm2, %v1977_v16, -inf }
 0x5f2   : > { %1982 = vmax.xlane.f32.xlu1 %v1981_v17 }
 0x604   : > { %v1855_v18 = vpop.xlane.xlu1 %1854 }
 0x605   : > { %v1859_v19 = vsub.f32 %v1850_v63, %v1855_v18 }
 0x607   : > { %v1861_v20 = vmul.f32 1.442695, %v1859_v19 }
 0x608   : > { %v1858_v21 = vpop.xlane.xlu0 %1857 }
 0x609   : > { %4355 = vpow2.f32 %v1861_v20  ;;  %v1860_v22 = vsub.f32 %v1851_v6, %v1858_v21 }
 0x60b   : > { %v1863_v23 = vmul.f32 1.442695, %v1860_v22 }
 0x60d   : > { %4357 = vpow2.f32 %v1863_v23 }
 0x616   : > { %v4356_v24 = vpop.eup %4355 }
 0x617   : > { %v1865_v25 = vsel %vm1852_vm2, %v4356_v24, 0.0 }
 0x618   : > { %1866 = vadd.xlane.f32.xlu0 %v1865_v25 }
 0x61a   : > { %v4358_v26 = vpop.eup %4357 }
 0x61b   : > { %v1868_v27 = vsel %vm1852_vm2, %v4358_v26, 0.0 }
 0x61c   : > { %1869 = vadd.xlane.f32.xlu1 %v1868_v27 }
 0x677   : > { %v1980_v28 = vpop.xlane.xlu0 %1979 }
 0x678   : > { %v1984_v32 = vsub.f32 %v1976_v11, %v1980_v28 }
 0x67a   : > { %v1986_v34 = vmul.f32 1.442695, %v1984_v32 }
 0x67b   : > { %v1983_v35 = vpop.xlane.xlu1 %1982 }
 0x67c   : > { %4359 = vpow2.f32 %v1986_v34  ;;  %v1985_v36 = vsub.f32 %v1977_v16, %v1983_v35 }
 0x67e   : > { %v1988_v37 = vmul.f32 1.442695, %v1985_v36 }
 0x680   : > { %4361 = vpow2.f32 %v1988_v37 }
 0x689   : > { %v4360_v38 = vpop.eup %4359 }
 0x68a   : > { %v1990_v39 = vsel %vm1852_vm2, %v4360_v38, 0.0 }
 0x68b   : > { %1991 = vadd.xlane.f32.xlu0 %v1990_v39 }
 0x68d   : > { %v4362_v40 = vpop.eup %4361 }
 0x68e   : > { %v1993_v41 = vsel %vm1852_vm2, %v4362_v40, 0.0 }
 0x68f   : > { %1994 = vadd.xlane.f32.xlu1 %v1993_v41 }
 0x6a0   : > { %2164 = vrot.lane.b32.xlu1 %v4932_v54, %s4539_s22 }
 0x6a1   : > { %2002 = vrot.lane.b32.xlu0 %v4930_v52, %s4538_s8  ;;  %v1867_v42 = vpop.xlane.xlu0 %1866 }
 0x6a2   : > { %4363 = vrcp.f32 %v1867_v42 }
 0x6a4   : > { %2162 = vrot.lane.b32.xlu1 %v4928_v51, %s4539_s22 }
 0x6a5   : > { %v1870_v44 = vpop.xlane.xlu1 %1869 }
 0x6a6   : > { %4365 = vrcp.f32 %v1870_v44 }
 0x6af   : > { %v4364_v45 = vpop.eup %4363 }
 0x6b0   : > { %v1873_v47 = vmul.f32 %v4364_v45, %v4356_v24 }
 0x6b3   : > { %v4366_v46 = vpop.eup %4365 }
 0x6b4   : > { %v1874_v48 = vmul.f32 %v4366_v46, %v4358_v26 }
 0x6b6   : > { %v1875_v49 = vpack.c.bf16 %v1874_v48, %v1873_v47 }
 0x6b8   : > { %4013 = vmatmul.mubr.msk.bf16.vlgmr.msra.gmra.mxu1 %vm1852_vm2, %v1875_v49 }
 0x6b9   : > { %4024 = vmatprep.mubr.msk.bf16.mxu1 %vm4537_vm0, %v4535_v43 }
 0x714   : > { %v1992_v53 = vpop.xlane.xlu0 %1991 }
 0x715   : > { %4367 = vrcp.f32 %v1992_v53 }
 0x718   : > { %v2003_v55 = vpop.permute.xlu0 %2002  ;;  %v1995_v56 = vpop.xlane.xlu1 %1994 }
 0x719   : > { %4369 = vrcp.f32 %v1995_v56  ;;  %4023 = vmatpush3.bf16.msra.mxu1 %v2003_v55 }
 0x71a   : > { %4036 = vmatprep.subr.bf16.mxu1 %v4535_v43 }
 0x71c   : > { %v2165_v11 = vpop.permute.xlu1 %2164 }
 0x71d   : > { %v2170_v15 = vsel %vm1800_vm1, %v2165_v11, 0 }
 0x720   : > { %v2163_v16 = vpop.permute.xlu1 %2162 }
 0x722   : > { %v4368_v57 = vpop.eup %4367 }
 0x723   : > { %v1998_v59 = vmul.f32 %v4368_v57, %v4360_v38 }
 0x726   : > { %v4370_v58 = vpop.eup %4369 }
 0x727   : > { %v1999_v61 = vmul.f32 %v4370_v58, %v4362_v40 }
 0x729   : > { %v2000_v63 = vpack.c.bf16 %v1999_v61, %v1998_v59 }
 0x72b   : > { %4025 = vmatmul.mubr.msk.bf16.vlgmr.msra.gmra.mxu1 %vm1852_vm2, %v2000_v63  ;;  %v4267_v63 = vld [vmem:[%s4786_s30 + $0x28] sm:$0xff]  }
 0x72c   : > { %4037 = vmatpush3.bf16.msra.mxu1 %v4263_v62  ;;  %4040 = vmatprep.mubr.msk.bf16.mxu1 %vm4537_vm0, %v4535_v43 }
 0x72d   : > { %4038 = vmatprep.subr.bf16.mxu1 %v4535_v43 }
 0x730   : > { %4039 = vmatpush3.bf16.msra.mxu1 %v4264_v0  ;;  %v4268_v0 = vld [vmem:[%s4786_s30 + $0x20] sm:$0xff]  }
 0x731   : > { %4050 = vmatprep.subr.bf16.mxu1 %v4535_v43 }
 0x778   : > { %v1913_v4 = vpop.f32.mrf.mxu1 }
 0x77a   : > { %v4014_v5 = vpop.f32.mrf.mxu1 }
 0x77c   : > { %v1916_v6 = vpop.f32.mrf.mxu1 }
 0x77d   : > { %v1920_v7 = vpack.c.bf16 %v1916_v6, %v1913_v4 }
 0x77e   : > { %v4015_v8 = vpop.f32.mrf.mxu1 }
 0x77f   : > { %4041 = vmatmul.mubr.msk.bf16.vlgmr.msra.gmra.mxu1 %vm1800_vm1, %v1920_v7 }
 0x780   : > { %4052 = vmatprep.mubr.msk.bf16.mxu1 %vm4537_vm0, %v4535_v43 }
 0x7eb   : > { %v2042_v9 = vpop.f32.mrf.mxu1 }
 0x7ed   : > { %v4026_v10 = vpop.f32.mrf.mxu1 }
 0x7ef   : > { %v2045_v12 = vpop.f32.mrf.mxu1 }
 0x7f0   : > { %v2049_v13 = vpack.c.bf16 %v2045_v12, %v2042_v9 }
 0x7f1   : > { %v4027_v14 = vpop.f32.mrf.mxu1 }
 0x7f2   : > { %4033 = vmatmul.mubr.msk.bf16.vlgmr.msra.gmra.mxu0 %vm1800_vm1, %v2049_v13 }
 0x7f3   : > { %4045 = vmatpush3.bf16.xpose.msra.mxu0 %v2170_v15  ;;  %4046 = vmatprep.mubr.msk.bf16.mxu0 %vm4537_vm0, %v4535_v43 }
 0x7f4   : > { %4056 = vmatprep.subr.bf16.mxu0 %v4535_v43 }
 0x7fa   : > { %4047 = vmatmul.mubr.msk.bf16.vlgmr.msra.gmra.mxu0 %vm1800_vm1, %v2163_v16 }
 0x7fb   : > { %4060 = vmatprep.mubr.msk.bf16.mxu0 %vm4537_vm0, %v4535_v43  ;;  %4057 = vmatpush3.bf16.msra.mxu0 %v4267_v63 }
 0x7fc   : > { %4058 = vmatprep.subr.bf16.mxu0 %v4535_v43 }
 0x7ff   : > { %4059 = vmatpush3.bf16.msra.mxu0 %v4268_v0 }
 0x800   : > { %4070 = vmatprep.subr.bf16.mxu0 %v4535_v43 }
 0x83f   : > { %v5006_v17 = vpop.f32.mrf.mxu1 }
 0x841   : > { %v4042_v18 = vpop.f32.mrf.mxu1 }
 0x843   : > { %v5008_v19 = vpop.f32.mrf.mxu1 }
 0x845   : > { %v4043_v20 = vpop.f32.mrf.mxu1 }
 0x8b2   : > { %v5010_v21 = vpop.f32.mrf.mxu0 }
 0x8b4   : > { %v4034_v22 = vpop.f32.mrf.mxu0 }
 0x8b6   : > { %v5012_v23 = vpop.f32.mrf.mxu0 }
 0x8b8   : > { %v4035_v24 = vpop.f32.mrf.mxu0 }
 0x8ba   : > { %v2206_v25 = vpop.f32.mrf.mxu0 }
 0x8bb   : > { %v2213_v26 = vmul.f32 0.17677669, %v2206_v25 }
 0x8bc   : > { %v4048_v27 = vpop.f32.mrf.mxu0 }
 0x8bd   : > { %v2215_v28 = vadd.f32 %v2213_v26, %v4955_v60 }
 0x8be   : > { %v2209_v32 = vpop.f32.mrf.mxu0 }
 0x8bf   : > { %v2214_v34 = vmul.f32 0.17677669, %v2209_v32  ;;  %v2217_v35 = vsel %vm1852_vm2, %v2215_v28, -inf }
 0x8c0   : > { %2218 = vmax.xlane.f32.xlu1 %v2217_v35  ;;  %v4049_v36 = vpop.f32.mrf.mxu0 }
 0x8c1   : > { %v2216_v37 = vadd.f32 %v2214_v34, %v4961_v1 }
 0x8c3   : > { %v2220_v38 = vsel %vm1852_vm2, %v2216_v37, -inf }
 0x8c4   : > { %2221 = vmax.xlane.f32.xlu0 %v2220_v38  ;;  %v2159_v38 = vadd.f32 %v5008_v19, %v5012_v23  ;;  %v4269_v19 = vld [vmem:[%s4786_s30 + $0x38] sm:$0xff]   ;;  %v4270_v23 = vld [vmem:[%s4786_s30 + $0x30] sm:$0xff]   ;;  %s5312_s30 = scalar_lea.vmem %s5252_s11, %s4771_s20  ;;  %s5317_s20 = sld [smem:[#allocation21_spill]] (!%p3811_p13) }
 0x8d1   : > { %2240 = vrot.lane.b32.xlu1 %v4930_v52, %s4539_s22  ;;  %s5318_s22 = sld [smem:[#allocation22_spill]] (!%p3811_p13) }
 0x8d5   : > { %2346 = vrot.lane.b32.xlu1 %v4928_v51, %s4540_s26 }
 0x949   : > { %v2219_v39 = vpop.xlane.xlu1 %2218 }
 0x94a   : > { %v2223_v40 = vsub.f32 %v2215_v28, %v2219_v39 }
 0x94c   : > { %v2225_v41 = vmul.f32 1.442695, %v2223_v40 }
 0x94d   : > { %v2241_v42 = vpop.permute.xlu1 %2240  ;;  %v2222_v44 = vpop.xlane.xlu0 %2221 }
 0x94e   : > { %4371 = vpow2.f32 %v2225_v41  ;;  %v2224_v45 = vsub.f32 %v2216_v37, %v2222_v44  ;;  %4051 = vmatpush3.bf16.msra.mxu1 %v2241_v42 }
 0x94f   : > { %4064 = vmatprep.subr.bf16.mxu1 %v4535_v43 }
 0x950   : > { %v2227_v46 = vmul.f32 1.442695, %v2224_v45 }
 0x952   : > { %4373 = vpow2.f32 %v2227_v46 }
 0x95b   : > { %v4372_v47 = vpop.eup %4371 }
 0x95c   : > { %v2229_v48 = vsel %vm1852_vm2, %v4372_v47, 0.0 }
 0x95d   : > { %2230 = vadd.xlane.f32.xlu0 %v2229_v48 }
 0x95f   : > { %v4374_v49 = vpop.eup %4373 }
 0x960   : > { %v2232_v50 = vsel %vm1852_vm2, %v4374_v49, 0.0 }
 0x961   : > { %2233 = vadd.xlane.f32.xlu0 %v2232_v50 }
 0x977   : > { %2348 = vrot.lane.b32.xlu0 %v4932_v54, %s4540_s26  ;;  %v2347_v54 = vpop.permute.xlu1 %2346 }
 0x9e6   : > { %v2231_v51 = vpop.xlane.xlu0 %2230 }
 0x9e7   : > { %4375 = vrcp.f32 %v2231_v51 }
 0x9ea   : > { %v2234_v53 = vpop.xlane.xlu0 %2233 }
 0x9eb   : > { %4377 = vrcp.f32 %v2234_v53 }
 0x9ee   : > { %v2349_v59 = vpop.permute.xlu0 %2348 }
 0x9ef   : > { %v2354_v62 = vsel %vm1800_vm1, %v2349_v59, 0 }
 0x9f4   : > { %v4376_v55 = vpop.eup %4375 }
 0x9f5   : > { %v2237_v57 = vmul.f32 %v4376_v55, %v4372_v47 }
 0x9f8   : > { %v4378_v56 = vpop.eup %4377 }
 0x9f9   : > { %v2238_v58 = vmul.f32 %v4378_v56, %v4374_v49 }
 0x9fb   : > { %v2239_v61 = vpack.c.bf16 %v2238_v58, %v2237_v57  ;;  %v4423_v58 = vld [vmem:[#allocation2] sm:$0xff] }
 0x9fd   : > { %4053 = vmatmul.mubr.msk.bf16.vlgmr.msra.gmra.mxu1 %vm1852_vm2, %v2239_v61 }
 0x9fe   : > { %4065 = vmatpush3.bf16.xpose.msra.mxu1 %v2354_v62  ;;  %4066 = vmatprep.mubr.msk.bf16.mxu1 %vm4537_vm0, %v4535_v43 }
 0x9ff   : > { %4076 = vmatprep.subr.bf16.mxu1 %v4535_v43 }
 0xa05   : > { %4067 = vmatmul.mubr.msk.bf16.vlgmr.msra.gmra.mxu1 %vm1800_vm1, %v2347_v54 }
 0xa06   : > { %4080 = vmatprep.mubr.msk.bf16.mxu1 %vm4537_vm0, %v4535_v43  ;;  %4077 = vmatpush3.bf16.msra.mxu1 %v4269_v19 }
 0xa07   : > { %4078 = vmatprep.subr.bf16.mxu1 %v4535_v43 }
 0xa0a   : > { %4079 = vmatpush3.bf16.msra.mxu1 %v4270_v23 }
 0xabd   : > { %v2280_v3 = vpop.f32.mrf.mxu1 }
 0xabf   : > { %v4054_v4 = vpop.f32.mrf.mxu1 }
 0xac0   : > { %v4271_v4 = vld [vmem:[%s4809_s10 + $0xe0] ss:$16 sps:$4 sm:$0xff]  }
 0xac1   : > { %v2283_v5 = vpop.f32.mrf.mxu1 }
 0xac2   : > { %v2287_v6 = vpack.c.bf16 %v2283_v5, %v2280_v3  ;;  %v4273_v5 = vld [vmem:[%s4809_s10 + $0xe4] ss:$16 sps:$4 sm:$0xff]  }
 0xac3   : > { %v4055_v7 = vpop.f32.mrf.mxu1 }
 0xac4   : > { %4061 = vmatmul.mubr.msk.bf16.vlgmr.msra.gmra.mxu0 %vm1800_vm1, %v2287_v6  ;;  %v4274_v6 = vld [vmem:[%s4809_s10 + $0xe8] ss:$16 sps:$4 sm:$0xff]   ;;  %v4276_v7 = vld [vmem:[%s4809_s10 + $0xec] ss:$16 sps:$4 sm:$0xff]  }
 0xac5   : > { %v2390_v8 = vpop.f32.mrf.mxu1  ;;  %4072 = vmatprep.mubr.msk.bf16.mxu0 %vm4537_vm0, %v4535_v43  ;;  %v3735_v43 = vld [vmem:[%s5312_s30] ss:$0 sm:$0xff]  ;;  %2839 = vmatprep.subr.bf16.mxu1 %v4276_v7  ;;  %v4323_v7 = vld [vmem:[%s4820_s0 + $0x70] sm:$0xff]  }
 0xac6   : > { %v2397_v9 = vmul.f32 0.17677669, %v2390_v8 }
 0xac7   : > { %v4068_v10 = vpop.f32.mrf.mxu1 }
 0xac8   : > { %v2399_v11 = vadd.f32 %v2397_v9, %v4955_v60 }
 0xac9   : > { %v2393_v12 = vpop.f32.mrf.mxu1 }
 0xaca   : > { %v2398_v13 = vmul.f32 0.17677669, %v2393_v12  ;;  %v2401_v14 = vsel %vm1852_vm2, %v2399_v11, -inf }
 0xacb   : > { %2402 = vmax.xlane.f32.xlu1 %v2401_v14  ;;  %v4069_v15 = vpop.f32.mrf.mxu1 }
 0xacc   : > { %v2400_v16 = vadd.f32 %v2398_v13, %v4961_v1  ;;  %v2156_v1 = vadd.f32 %v5006_v17, %v5010_v21 }
 0xace   : > { %v2404_v18 = vsel %vm1852_vm2, %v2400_v16, -inf }
 0xacf   : > { %2405 = vmax.xlane.f32.xlu0 %v2404_v18  ;;  %v4282_v18 = vld [vmem:[%s4809_s10 + $0xcc] ss:$16 sps:$4 sm:$0xff]  }
 0xb54   : > { %v2403_v20 = vpop.xlane.xlu1 %2402 }
 0xb55   : > { %v2407_v22 = vsub.f32 %v2399_v11, %v2403_v20  ;;  %v4277_v20 = vld [vmem:[%s4809_s10 + $0xc0] ss:$16 sps:$4 sm:$0xff]  }
 0xb57   : > { %v2409_v24 = vmul.f32 1.442695, %v2407_v22  ;;  %v4280_v22 = vld [vmem:[%s4809_s10 + $0xc8] ss:$16 sps:$4 sm:$0xff]  }
 0xb58   : > { %v2406_v25 = vpop.xlane.xlu0 %2405 }
 0xb59   : > { %4379 = vpow2.f32 %v2409_v24  ;;  %v2408_v26 = vsub.f32 %v2400_v16, %v2406_v25  ;;  %v4279_v16 = vld [vmem:[%s4809_s10 + $0xc4] ss:$16 sps:$4 sm:$0xff]   ;;  %v4288_v25 = vld [vmem:[%s4809_s10 + $0xac] ss:$16 sps:$4 sm:$0xff]  }
 0xb5a   : > { %v4285_v24 = vld [vmem:[%s4809_s10 + $0xa4] ss:$16 sps:$4 sm:$0xff]  }
 0xb5b   : > { %v2411_v27 = vmul.f32 1.442695, %v2408_v26  ;;  %v4283_v26 = vld [vmem:[%s4809_s10 + $0xa0] ss:$16 sps:$4 sm:$0xff]  }
 0xb5d   : > { %4381 = vpow2.f32 %v2411_v27  ;;  %v4286_v27 = vld [vmem:[%s4809_s10 + $0xa8] ss:$16 sps:$4 sm:$0xff]  }
 0xb66   : > { %v4380_v60 = vpop.eup %4379 }
 0xb67   : > { %v2413_v28 = vsel %vm1852_vm2, %v4380_v60, 0.0 }
 0xb68   : > { %2414 = vadd.xlane.f32.xlu0 %v2413_v28  ;;  %v4291_v28 = vld [vmem:[%s4809_s10 + $0x84] ss:$16 sps:$4 sm:$0xff]  }
 0xb6a   : > { %v4382_v32 = vpop.eup %4381 }
 0xb6b   : > { %v2416_v34 = vsel %vm1852_vm2, %v4382_v32, 0.0 }
 0xb6c   : > { %2417 = vadd.xlane.f32.xlu1 %v2416_v34  ;;  %v4294_v34 = vld [vmem:[%s4809_s10 + $0x8c] ss:$16 sps:$4 sm:$0xff]  }
 0xb7e   : > { %2424 = vrot.lane.b32.xlu0 %v4930_v52, %s4540_s26 }
 0xb84   : > { %v2337_v35 = vpop.f32.mrf.mxu0 }
 0xb85   : > { %v2344_v36 = vadd.f32 %v2337_v35, %v2156_v1  ;;  %v4297_v1 = vld [vmem:[%s4809_s10 + $0x64] ss:$16 sps:$4 sm:$0xff]   ;;  %v4300_v35 = vld [vmem:[%s4809_s10 + $0x6c] ss:$16 sps:$4 sm:$0xff]  }
 0xb86   : > { %v4062_v37 = vpop.f32.mrf.mxu0 }
 0xb87   : > { %v4298_v37 = vld [vmem:[%s4809_s10 + $0x68] ss:$16 sps:$4 sm:$0xff]  }
 0xb88   : > { %v2340_v39 = vpop.f32.mrf.mxu0 }
 0xb89   : > { %v2345_v40 = vadd.f32 %v2340_v39, %v2159_v38  ;;  %v4303_v38 = vld [vmem:[%s4809_s10 + $0x44] ss:$16 sps:$4 sm:$0xff]   ;;  %v4306_v39 = vld [vmem:[%s4809_s10 + $0x4c] ss:$16 sps:$4 sm:$0xff]  }
 0xb8a   : > { %v4063_v41 = vpop.f32.mrf.mxu0 }
 0xb8b   : > { %v4304_v41 = vld [vmem:[%s4809_s10 + $0x48] ss:$16 sps:$4 sm:$0xff]  }
 0xbf1   : > { %v2415_v42 = vpop.xlane.xlu0 %2414 }
 0xbf2   : > { %4383 = vrcp.f32 %v2415_v42  ;;  %v4309_v42 = vld [vmem:[%s4809_s10 + $0x24] ss:$16 sps:$4 sm:$0xff]  }
 0xbf5   : > { %v2418_v44 = vpop.xlane.xlu1 %2417  ;;  %v2425_v45 = vpop.permute.xlu0 %2424 }
 0xbf6   : > { %4385 = vrcp.f32 %v2418_v44  ;;  %4071 = vmatpush3.bf16.msra.mxu0 %v2425_v45  ;;  %v4312_v44 = vld [vmem:[%s4809_s10 + $0x2c] ss:$16 sps:$4 sm:$0xff]   ;;  %v4307_v45 = vld [vmem:[%s4809_s10 + $0x20] ss:$16 sps:$4 sm:$0xff]  }
 0xbf7   : > { %2796 = vmatprep.subr.bf16.mxu0 %v4273_v5  ;;  %v4321_v5 = vld [vmem:[%s4820_s0 + $0x38] sm:$0xff]  }
 0xbff   : > { %v4384_v52 = vpop.eup %4383 }
 0xc00   : > { %v2421_v17 = vmul.f32 %v4384_v52, %v4380_v60  ;;  %v4289_v60 = vld [vmem:[%s4809_s10 + $0x80] ss:$16 sps:$4 sm:$0xff]   ;;  %v4310_v52 = vld [vmem:[%s4809_s10 + $0x28] ss:$16 sps:$4 sm:$0xff]  }
 0xc03   : > { %v4386_v46 = vpop.eup %4385 }
 0xc04   : > { %v2422_v21 = vmul.f32 %v4386_v46, %v4382_v32  ;;  %v4292_v32 = vld [vmem:[%s4809_s10 + $0x88] ss:$16 sps:$4 sm:$0xff]   ;;  %v4315_v46 = vld [vmem:[%s4809_s10 + $0x4] ss:$16 sps:$4 sm:$0xff]  }
 0xc06   : > { %v2423_v47 = vpack.c.bf16 %v2422_v21, %v2421_v17  ;;  %v4318_v17 = vld [vmem:[%s4809_s10 + $0xc] ss:$16 sps:$4 sm:$0xff]   ;;  %v4313_v21 = vld [vmem:[%s4809_s10] ss:$16 sps:$4 sm:$0xff]  }
 0xc08   : > { %4073 = vmatmul.mubr.msk.bf16.vlgmr.msra.gmra.mxu0 %vm1852_vm2, %v2423_v47  ;;  %v4316_v47 = vld [vmem:[%s4809_s10 + $0x8] ss:$16 sps:$4 sm:$0xff]  }
 0xc09   : > { %2828 = vmatprep.mubr.bf16.mxu0 %v4536_v2  ;;  %2797 = vmatpush1.bf16.msra.mxu0 %v4271_v4  ;;  %v4320_v4 = vld [vmem:[%s4820_s0 + $0xf8] sm:$0xff]  }
 0xc0a   : > { %2798 = vmatprep.subr.bf16.mxu0 %v4279_v16  ;;  %v4332_v16 = vld [vmem:[%s4820_s0 + $0xe0] sm:$0xff]  }
 0xc0d   : > { %2799 = vmatpush1.bf16.msra.mxu0 %v4277_v20  ;;  %v4334_v20 = vld [vmem:[%s4820_s0 + $0xa0] sm:$0xff]  }
 0xc0e   : > { %2800 = vmatprep.subr.bf16.mxu0 %v4285_v24  ;;  %v4336_v24 = vld [vmem:[%s4820_s0 + $0xd8] sm:$0xff]  }
 0xc11   : > { %2801 = vmatpush1.bf16.msra.mxu0 %v4283_v26  ;;  %v4338_v26 = vld [vmem:[%s4820_s0 + $0x98] sm:$0xff]  }
 0xc12   : > { %2802 = vmatprep.subr.bf16.mxu0 %v4291_v28  ;;  %v4341_v28 = vld [vmem:[%s4820_s0 + $0x10] sm:$0xff]  }
 0xc15   : > { %2803 = vmatpush1.bf16.msra.mxu0 %v4289_v60  ;;  %v4340_v60 = vld [vmem:[%s4820_s0 + $0xd0] sm:$0xff]  }
 0xc16   : > { %2804 = vmatprep.subr.bf16.mxu0 %v4297_v1  ;;  %v4344_v1 = vld [vmem:[%s4820_s0 + $0xc8] sm:$0xff]  }
 0xcc8   : > { %v2464_v48 = vpop.f32.mrf.mxu0 }
 0xcca   : > { %v4074_v49 = vpop.f32.mrf.mxu0 }
 0xccc   : > { %v2467_v50 = vpop.f32.mrf.mxu0 }
 0xccd   : > { %v2471_v51 = vpack.c.bf16 %v2467_v50, %v2464_v48 }
 0xcce   : > { %v4075_v53 = vpop.f32.mrf.mxu0 }
 0xccf   : > { %4081 = vmatmul.mubr.msk.bf16.vlgmr.msra.gmra.mxu1 %vm1800_vm1, %v2471_v51 }
 0xcd0   : > { %2871 = vmatprep.mubr.bf16.mxu1 %v4536_v2  ;;  %v4424_v2 = vld [vmem:[#allocation2 + $0x8] sm:$0xff]  ;;  %2840 = vmatpush1.bf16.msra.mxu1 %v4274_v6  ;;  %v4322_v6 = vld [vmem:[%s4820_s0 + $0xb8] sm:$0xff]  }
 0xcd1   : > { %2841 = vmatprep.subr.bf16.mxu1 %v4282_v18  ;;  %v4333_v18 = vld [vmem:[%s4820_s0 + $0x20] sm:$0xff]  }
 0xcd4   : > { %2842 = vmatpush1.bf16.msra.mxu1 %v4280_v22  ;;  %v4335_v22 = vld [vmem:[%s4820_s0 + $0x58] sm:$0xff]  }
 0xcd5   : > { %2843 = vmatprep.subr.bf16.mxu1 %v4288_v25  ;;  %v4337_v25 = vld [vmem:[%s4820_s0 + $0x18] sm:$0xff]  }
 0xcd8   : > { %2844 = vmatpush1.bf16.msra.mxu1 %v4286_v27  ;;  %v4339_v27 = vld [vmem:[%s4820_s0 + $0x50] sm:$0xff]  }
 0xcd9   : > { %2845 = vmatprep.subr.bf16.mxu1 %v4294_v34  ;;  %v4343_v34 = vld [vmem:[%s4820_s0 + $0x48] sm:$0xff]  }
 0xcdc   : > { %2846 = vmatpush1.bf16.msra.mxu1 %v4292_v32  ;;  %v4342_v32 = vld [vmem:[%s4820_s0 + $0x90] sm:$0xff]  }
 0xcdd   : > { %2847 = vmatprep.subr.bf16.mxu1 %v4300_v35  ;;  %v4345_v35 = vld [vmem:[%s4820_s0 + $0x8] sm:$0xff]  }
 0xce0   : > { %2848 = vmatpush1.bf16.msra.mxu1 %v4298_v37  ;;  %v4347_v37 = vld [vmem:[%s4820_s0 + $0x40] sm:$0xff]  }
 0xce1   : > { %2849 = vmatprep.subr.bf16.mxu1 %v4306_v39  ;;  %v4349_v39 = vld [vmem:[%s4820_s0] sm:$0xff]  }
 0xce4   : > { %2850 = vmatpush1.bf16.msra.mxu1 %v4304_v41  ;;  %v2614_v41 = vld [vmem:[%s4815_s21] sm:$0xf] }
 0xce5   : > { %2851 = vmatprep.subr.bf16.mxu1 %v4312_v44  ;;  %v2619_v44 = vrot.slane %v2614_v41, %v1556_v30 }
 0xce8   : > { %2852 = vmatpush1.bf16.msra.mxu1 %v4310_v52  ;;  %v2623_v52 = vrot.slane %v2614_v41, %v1560_v33 }
 0xce9   : > { %2853 = vmatprep.subr.bf16.mxu1 %v4318_v17 }
 0xcec   : > { %2854 = vmatpush1.bf16.msra.mxu1 %v4316_v47 }
 0xced   : > { %3953 = vmatprep.subr.bf16.mxu1 %v4320_v4 }
 0xd8f   : > { %v2521_v55 = vpop.f32.mrf.mxu1 }
 0xd90   : > { %v2528_v56 = vadd.f32 %v2521_v55, %v2344_v36  ;;  %v4295_v36 = vld [vmem:[%s4809_s10 + $0x60] ss:$16 sps:$4 sm:$0xff]  }
 0xd91   : > { %v4082_v57 = vpop.f32.mrf.mxu1  ;;  %2805 = vmatpush1.bf16.msra.mxu0 %v4295_v36  ;;  %v4346_v36 = vld [vmem:[%s4820_s0 + $0x88] sm:$0xff]  }
 0xd92   : > { %v2530_v59 = vadd.f32 %v4423_v58, %v2528_v56  ;;  %2806 = vmatprep.subr.bf16.mxu0 %v4303_v38  ;;  %v3736_v56 = vld [vmem:[%s861_s25] ss:$0 sm:$0xff] }
 0xd93   : > { %v2524_v61 = vpop.f32.mrf.mxu1  ;;  %v4348_v38 = vld [vmem:[%s4820_s0 + $0xc0] sm:$0xff]  }
 0xd94   : > { %v2529_v62 = vadd.f32 %v2524_v61, %v2345_v40  ;;  %v5066_v54 = vadd.f32 %v3735_v43, %v2530_v59  ;;  %v4301_v40 = vld [vmem:[%s4809_s10 + $0x40] ss:$16 sps:$4 sm:$0xff]   ;;  %s5320_s10 = sld [smem:[#allocation25_spill]] (!%p3811_p13) }
 0xd95   : > { %v4083_v63 = vpop.f32.mrf.mxu1  ;;  %2807 = vmatpush1.bf16.msra.mxu0 %v4301_v40  ;;  %v3737_v59 = vld [vmem:[%s5313_s19] ss:$0 sm:$0xff] }
 0xd96   : > { %v2531_v0 = vadd.f32 %v4424_v2, %v2529_v62  ;;  %2543 = vadd.xlane.f32.xlu1 %v5066_v54  ;;  %2808 = vmatprep.subr.bf16.mxu0 %v4309_v42  ;;  %v4350_v40 = vld [vmem:[%s4820_s0 + $0x80] sm:$0xff]   ;;  %v2630_v42 = vsub.s32 3, %v4916_v29 }
 0xd98   : > { %v5069_v3 = vadd.f32 %v3735_v43, %v2531_v0  ;;  %v4319_v0 = vld [vmem:[%s4820_s0 + $0x78] sm:$0xff]  }
 0xd99   : > { %2809 = vmatpush1.bf16.msra.mxu0 %v4307_v45  ;;  %v2627_v45 = vrot.slane %v2614_v41, %v1564_v31 }
 0xd9a   : > { %2545 = vadd.xlane.f32.xlu1 %v5069_v3  ;;  %2810 = vmatprep.subr.bf16.mxu0 %v4315_v46  ;;  %v2631_v46 = vrot.slane %v2614_v41, %v2630_v42 }
 0xd9d   : > { %2811 = vmatpush1.bf16.msra.mxu0 %v4313_v21 }
 0xd9e   : > { %3931 = vmatprep.subr.bf16.mxu0 %v4319_v0 }
 0xe1f   : > { %v2544_v8 = vpop.xlane.xlu1 %2543 }
 0xe20   : > { %v2547_v9 = vmul.f32 0.0078125, %v2544_v8  ;;  %v4324_v8 = vld [vmem:[%s4820_s0 + $0xf0] sm:$0xff]  }
 0xe22   : > { %v5077_v10 = vsub.f32 %v5066_v54, %v2547_v9  ;;  %v4325_v9 = vld [vmem:[%s4820_s0 + $0x30] sm:$0xff]  }
 0xe23   : > { %v2546_v11 = vpop.xlane.xlu1 %2545 }
 0xe24   : > { %v2548_v12 = vmul.f32 0.0078125, %v2546_v11  ;;  %v2551_v13 = vmul.f32 %v5077_v10, %v5077_v10  ;;  %v4327_v11 = vld [vmem:[%s4820_s0 + $0x68] sm:$0xff]  }
 0xe26   : > { %v5082_v14 = vsub.f32 %v5069_v3, %v2548_v12  ;;  %2553 = vadd.xlane.f32.xlu1 %v2551_v13  ;;  %v4328_v12 = vld [vmem:[%s4820_s0 + $0xe8] sm:$0xff]  }
 0xe27   : > { %v4329_v13 = vld [vmem:[%s4820_s0 + $0x28] sm:$0xff]  }
 0xe28   : > { %v2552_v15 = vmul.f32 %v5082_v14, %v5082_v14 }
 0xe2a   : > { %2555 = vadd.xlane.f32.xlu1 %v2552_v15  ;;  %v4331_v15 = vld [vmem:[%s4820_s0 + $0x60] sm:$0xff]  }
 0xeaf   : > { %v2554_v19 = vpop.xlane.xlu1 %2553 }
 0xeb0   : > { %v2557_v23 = vmul.f32 0.0078125, %v2554_v19 }
 0xeb2   : > { %v2559_v48 = vadd.f32 1e-05, %v2557_v23 }
 0xeb3   : > { %v2556_v49 = vpop.xlane.xlu1 %2555 }
 0xeb4   : > { %4387 = vrsqrt.f32 %v2559_v48  ;;  %v2558_v50 = vmul.f32 0.0078125, %v2556_v49 }
 0xeb6   : > { %v2560_v51 = vadd.f32 1e-05, %v2558_v50 }
 0xeb8   : > { %4389 = vrsqrt.f32 %v2560_v51 }
 0xec1   : > { %v4388_v53 = vpop.eup %4387 }
 0xec2   : > { %v2563_v55 = vmul.f32 %v4388_v53, %v5077_v10  ;;  %v4326_v10 = vld [vmem:[%s4820_s0 + $0xb0] sm:$0xff]  }
 0xec4   : > { %v2571_v58 = vmul.f32 %v3736_v56, %v2563_v55 }
 0xec5   : > { %v4390_v57 = vpop.eup %4389 }
 0xec6   : > { %v2564_v43 = vmul.f32 %v4390_v57, %v5082_v14  ;;  %v2579_v62 = vadd.f32 %v3737_v59, %v2571_v58  ;;  %v4330_v14 = vld [vmem:[%s4820_s0 + $0xa8] sm:$0xff]  }
 0xec8   : > { %v2572_v61 = vmul.f32 %v3736_v56, %v2564_v43 }
 0xeca   : > { %v2580_v63 = vadd.f32 %v3737_v59, %v2572_v61 }
 0xecc   : > { %v2581_v2 = vpack.c.bf16 %v2580_v63, %v2579_v62 }
 0xece   : > { %2829 = vmatmul.mubr.bf16.vlgmr.msra.gmra.mxu0 %v2581_v2  ;;  %2872 = vmatmul.mubr.bf16.vlgmr.msra.gmra.mxu1 %v2581_v2 }
 0xecf   : > { %3932 = vmatpush3.bf16.msra.mxu0 %v4321_v5  ;;  %3954 = vmatpush3.bf16.msra.mxu1 %v4322_v6 }
 0xed0   : > { %3933 = vmatprep.subr.bf16.mxu0 %v4323_v7  ;;  %3955 = vmatprep.subr.bf16.mxu1 %v4324_v8 }
 0xed3   : > { %3934 = vmatpush3.bf16.msra.mxu0 %v4325_v9  ;;  %3956 = vmatpush3.bf16.msra.mxu1 %v4326_v10 }
 0xed4   : > { %3935 = vmatprep.subr.bf16.mxu0 %v4327_v11  ;;  %3957 = vmatprep.subr.bf16.mxu1 %v4328_v12 }
 0xed7   : > { %3936 = vmatpush3.bf16.msra.mxu0 %v4329_v13  ;;  %3958 = vmatpush3.bf16.msra.mxu1 %v4330_v14 }
 0xed8   : > { %3937 = vmatprep.subr.bf16.mxu0 %v4331_v15  ;;  %3959 = vmatprep.subr.bf16.mxu1 %v4332_v16 }
 0xedb   : > { %3938 = vmatpush3.bf16.msra.mxu0 %v4333_v18  ;;  %3960 = vmatpush3.bf16.msra.mxu1 %v4334_v20 }
 0xedc   : > { %3939 = vmatprep.subr.bf16.mxu0 %v4335_v22  ;;  %3961 = vmatprep.subr.bf16.mxu1 %v4336_v24 }
 0xedf   : > { %3940 = vmatpush3.bf16.msra.mxu0 %v4337_v25  ;;  %3962 = vmatpush3.bf16.msra.mxu1 %v4338_v26 }
 0xee0   : > { %3941 = vmatprep.subr.bf16.mxu0 %v4339_v27  ;;  %3963 = vmatprep.subr.bf16.mxu1 %v4340_v60 }
 0xee3   : > { %3942 = vmatpush3.bf16.msra.mxu0 %v4341_v28  ;;  %3964 = vmatpush3.bf16.msra.mxu1 %v4342_v32 }
 0xee4   : > { %3943 = vmatprep.subr.bf16.mxu0 %v4343_v34  ;;  %3965 = vmatprep.subr.bf16.mxu1 %v4344_v1 }
 0xee7   : > { %3944 = vmatpush3.bf16.msra.mxu0 %v4345_v35  ;;  %3966 = vmatpush3.bf16.msra.mxu1 %v4346_v36 }
 0xee8   : > { %3945 = vmatprep.subr.bf16.mxu0 %v4347_v37  ;;  %3967 = vmatprep.subr.bf16.mxu1 %v4348_v38 }
 0xeeb   : > { %3946 = vmatpush3.bf16.msra.mxu0 %v4349_v39  ;;  %3968 = vmatpush3.bf16.msra.mxu1 %v4350_v40 }
 0xf8e   : > { %v2830_v17 = vpop.f32.mrf.mxu0  ;;  %v2873_v21 = vpop.f32.mrf.mxu1 }
 0xf8f   : > { %v5166_v47 = vadd.f32 %v2830_v17, %v2619_v44  ;;  %v5168_v19 = vadd.f32 %v2873_v21, %v2627_v45 }
 0xf90   : > { %v2832_v23 = vpop.f32.mrf.mxu0  ;;  %v2875_v48 = vpop.f32.mrf.mxu1 }
 0xf91   : > { %v3770_v49 = vmul.f32 -1.702, %v5166_v47  ;;  %v3772_v50 = vmul.f32 -1.702, %v5168_v19  ;;  %v5172_v30 = vadd.f32 %v2832_v23, %v2623_v52  ;;  %v5174_v51 = vadd.f32 %v2875_v48, %v2631_v46 }
 0xf92   : > { %v2834_v31 = vpop.f32.mrf.mxu0  ;;  %v2877_v29 = vpop.f32.mrf.mxu1 }
 0xf93   : > { %v2898_v33 = vmul.f32 1.442695, %v3770_v49  ;;  %v2902_v53 = vmul.f32 1.442695, %v3772_v50  ;;  %v3771_v55 = vmul.f32 -1.702, %v5172_v30  ;;  %v2835_v56 = vadd.f32 %v2834_v31, %v2619_v44 }
 0xf94   : > { %v3773_v57 = vmul.f32 -1.702, %v5174_v51  ;;  %v2878_v43 = vadd.f32 %v2877_v29, %v2627_v45  ;;  %v2836_v58 = vpop.f32.mrf.mxu0  ;;  %v2879_v59 = vpop.f32.mrf.mxu1 }
 0xf95   : > { %4391 = vpow2.f32 %v2898_v33  ;;  %v2900_v61 = vmul.f32 1.442695, %v3771_v55  ;;  %v3774_v62 = vmul.f32 -1.702, %v2835_v56  ;;  %v2837_v63 = vadd.f32 %v2836_v58, %v2623_v52 }
 0xf96   : > { %4393 = vpow2.f32 %v2902_v53  ;;  %v2904_v2 = vmul.f32 1.442695, %v3773_v57  ;;  %v3776_v0 = vmul.f32 -1.702, %v2878_v43  ;;  %v2880_v4 = vadd.f32 %v2879_v59, %v2631_v46 }
 0xf97   : > { %4395 = vpow2.f32 %v2900_v61  ;;  %v2906_v5 = vmul.f32 1.442695, %v3774_v62  ;;  %v3775_v6 = vmul.f32 -1.702, %v2837_v63 }
 0xf98   : > { %4397 = vpow2.f32 %v2904_v2  ;;  %v2910_v7 = vmul.f32 1.442695, %v3776_v0  ;;  %v3777_v8 = vmul.f32 -1.702, %v2880_v4 }
 0xf99   : > { %4399 = vpow2.f32 %v2906_v5  ;;  %v2908_v9 = vmul.f32 1.442695, %v3775_v6 }
 0xf9a   : > { %4401 = vpow2.f32 %v2910_v7  ;;  %v2912_v10 = vmul.f32 1.442695, %v3777_v8 }
 0xf9b   : > { %4403 = vpow2.f32 %v2908_v9 }
 0xf9c   : > { %4405 = vpow2.f32 %v2912_v10 }
 0xfa2   : > { %v4392_v11 = vpop.eup %4391 }
 0xfa3   : > { %v4394_v12 = vpop.eup %4393  ;;  %v2914_v13 = vadd.f32 1.0, %v4392_v11 }
 0xfa4   : > { %v4396_v14 = vpop.eup %4395  ;;  %v2916_v15 = vadd.f32 1.0, %v4394_v12 }
 0xfa5   : > { %v4398_v16 = vpop.eup %4397  ;;  %4407 = vrcp.f32 %v2914_v13  ;;  %v2915_v18 = vadd.f32 1.0, %v4396_v14 }
 0xfa6   : > { %v4400_v20 = vpop.eup %4399  ;;  %4409 = vrcp.f32 %v2916_v15  ;;  %v2917_v22 = vadd.f32 1.0, %v4398_v16 }
 0xfa7   : > { %v4402_v24 = vpop.eup %4401  ;;  %4411 = vrcp.f32 %v2915_v18  ;;  %v2918_v25 = vadd.f32 1.0, %v4400_v20 }
 0xfa8   : > { %v4404_v26 = vpop.eup %4403  ;;  %4413 = vrcp.f32 %v2917_v22  ;;  %v2920_v27 = vadd.f32 1.0, %v4402_v24 }
 0xfa9   : > { %v4406_v60 = vpop.eup %4405  ;;  %4415 = vrcp.f32 %v2918_v25  ;;  %v2919_v28 = vadd.f32 1.0, %v4404_v26 }
 0xfaa   : > { %4417 = vrcp.f32 %v2920_v27  ;;  %v2921_v32 = vadd.f32 1.0, %v4406_v60 }
 0xfab   : > { %4419 = vrcp.f32 %v2919_v28 }
 0xfac   : > { %4421 = vrcp.f32 %v2921_v32 }
 0xfb2   : > { %v4408_v34 = vpop.eup %4407 }
 0xfb3   : > { %v4410_v1 = vpop.eup %4409  ;;  %v2938_v52 = vmul.f32 %v4408_v34, %v5166_v47 }
 0xfb4   : > { %v4412_v35 = vpop.eup %4411  ;;  %v2940_v21 = vmul.f32 %v4410_v1, %v5168_v19  ;;  %v3810_v19 = vld [vmem:[%s881_s2] ss:$0 sm:$0xff] }
 0xfb5   : > { %v4414_v36 = vpop.eup %4413  ;;  %v2939_v42 = vmul.f32 %v4412_v35, %v5172_v30 }
 0xfb6   : > { %v4416_v37 = vpop.eup %4415  ;;  %v2941_v46 = vmul.f32 %v4414_v36, %v5174_v51 }
 0xfb7   : > { %v4418_v38 = vpop.eup %4417  ;;  %v2942_v40 = vmul.f32 %v4416_v37, %v2835_v56 }
 0xfb8   : > { %v4420_v39 = vpop.eup %4419  ;;  %v2944_v44 = vmul.f32 %v4418_v38, %v2878_v43 }
 0xfb9   : > { %v4422_v41 = vpop.eup %4421  ;;  %v2943_v45 = vmul.f32 %v4420_v39, %v2837_v63  ;;  %v2946_v48 = vpack.c.bf16 %v2942_v40, %v2938_v52 }
 0xfba   : > { %v2945_v17 = vmul.f32 %v4422_v41, %v2880_v4  ;;  %v2948_v50 = vpack.c.bf16 %v2944_v44, %v2940_v21 }
 0xfbb   : > { %v2947_v23 = vpack.c.bf16 %v2943_v45, %v2939_v42 }
 0xfbc   : > { %v2949_v49 = vpack.c.bf16 %v2945_v17, %v2941_v46 }
 0xfbd   : > { %3238 = vmatprep.mubr.bf16.mxu0 %v2947_v23 }
 0xfbe   : > { %3279 = vmatprep.mubr.bf16.mxu1 %v2949_v49  ;;  %3239 = vmatmul.mubr.bf16.vlgmr.msra.gmra.mxu0 %v2946_v48 }
 0xfbf   : > { %3280 = vmatmul.mubr.bf16.vlgmr.msra.gmra.mxu1 %v2948_v50 }
0x107e   : > { %v3947_v31 = vpop.f32.mrf.mxu0 }
0x107f   : > { %v3969_v30 = vpop.f32.mrf.mxu1 }
0x1080   : > { %v3948_v29 = vpop.f32.mrf.mxu0 }
0x1081   : > { %v3949_v33 = vadd.f32 %v3948_v29, %v3947_v31  ;;  %v3970_v53 = vpop.f32.mrf.mxu1 }
0x1082   : > { %v3971_v47 = vadd.f32 %v3970_v53, %v3969_v30  ;;  %v3950_v55 = vpop.f32.mrf.mxu0 }
0x1083   : > { %v3972_v51 = vpop.f32.mrf.mxu1 }
0x1084   : > { %v3282_v56 = vadd.f32 %v3971_v47, %v3949_v33  ;;  %v3951_v57 = vpop.f32.mrf.mxu0 }
0x1085   : > { %v3952_v43 = vadd.f32 %v3951_v57, %v3950_v55  ;;  %v3973_v58 = vpop.f32.mrf.mxu1 }
0x1086   : > { %v3288_v59 = vadd.f32 %v3282_v56, %v5066_v54  ;;  %v3974_v61 = vadd.f32 %v3973_v58, %v3972_v51 }
0x1088   : > { %v3297_v62 = vadd.f32 %v3810_v19, %v3288_v59  ;;  %v3285_v63 = vadd.f32 %v3974_v61, %v3952_v43 }
0x108a   : > { %3299 = vst [vmem:[#allocation2] sm:$0xff] %v3297_v62  ;;  %v3289_v2 = vadd.f32 %v3285_v63, %v5069_v3  ;;  %3304 = sbr.rel (%p3811_p13) target bundleno = 4751 (0x128f), region = 124 }
0x108c   : > { %v3298_v0 = vadd.f32 %v3810_v19, %v3289_v2 }
0x108e   : > { %3300 = vst [vmem:[#allocation2 + $0x8] sm:$0xff] %v3298_v0 }
0x108f   : > { %v3306_v4 = vrot.slane %v3298_v0, 7  ;;  %vm3308_vm3 = vcmask 1040384   ;;  %vm3312_vm4 = vcmask 1041408   ;;  %v4425_v54 = vld [vmem:[%s5315_s3 + $0x38] sm:$0xff]   ;;  %v4541_v7 = vmov 0.0   ;;  %v4426_v3 = vld [vmem:[%s5316_s27 + $0x30] sm:$0xff]  }
0x1090   : > { %4084 = vmatprep.subr.bf16.mxu0 %v4541_v7  ;;  %v4427_v13 = vld [vmem:[%s5316_s27 + $0x28] sm:$0xff]   ;;  %v4428_v14 = vld [vmem:[%s5316_s27 + $0x20] sm:$0xff]   ;;  %vm4542_vm5 = vmmov 0   ;;  %v4429_v15 = vld [vmem:[%s5316_s27 + $0x18] sm:$0xff]  }
0x1091   : > { %v3309_v5 = vsel %vm3308_vm3, %v3297_v62, %v3306_v4  ;;  %4085 = vmatpush3.bf16.msra.mxu0 %v4425_v54  ;;  %4100 = vmatprep.mubr.msk.bf16.mxu0 %vm4542_vm5, %v4541_v7  ;;  %v4430_v16 = vld [vmem:[%s5316_s27 + $0x10] sm:$0xff]   ;;  %v4431_v18 = vld [vmem:[%s5316_s27 + $0x8] sm:$0xff]   ;;  %v4432_v20 = vld [vmem:[%s5316_s27] sm:$0xff]  }
0x1092   : > { %v3313_v6 = vsel %vm3312_vm4, %v3309_v5, 0.0  ;;  %4086 = vmatprep.subr.bf16.mxu0 %v4541_v7  ;;  %v3812_v27 = vld [vmem:[%s5317_s20] ss:$0 sm:$0xff] }
0x1093   : > { %3314 = vadd.xlane.f32.xlu0 %v3313_v6  ;;  %v3813_v28 = vld [vmem:[%s5318_s22] ss:$0 sm:$0xff] }
0x1094   : > { %v3814_v35 = vld [vmem:[%s5319_s17] ss:$0 sm:$0xff] }
0x1095   : > { %4087 = vmatpush3.bf16.msra.mxu0 %v4426_v3 }
0x1096   : > { %4088 = vmatprep.subr.bf16.mxu0 %v4541_v7 }
0x1099   : > { %4089 = vmatpush3.bf16.msra.mxu0 %v4427_v13 }
0x109a   : > { %4090 = vmatprep.subr.bf16.mxu0 %v4541_v7 }
0x109d   : > { %4091 = vmatpush3.bf16.msra.mxu0 %v4428_v14 }
0x109e   : > { %4092 = vmatprep.subr.bf16.mxu0 %v4541_v7 }
0x10a1   : > { %4093 = vmatpush3.bf16.msra.mxu0 %v4429_v15 }
0x10a2   : > { %4094 = vmatprep.subr.bf16.mxu0 %v4541_v7 }
0x10a5   : > { %4095 = vmatpush3.bf16.msra.mxu0 %v4430_v16 }
0x10a6   : > { %4096 = vmatprep.subr.bf16.mxu0 %v4541_v7 }
0x10a9   : > { %4097 = vmatpush3.bf16.msra.mxu0 %v4431_v18 }
0x10aa   : > { %4098 = vmatprep.subr.bf16.mxu0 %v4541_v7 }
0x10ad   : > { %4099 = vmatpush3.bf16.msra.mxu0 %v4432_v20 }
0x111c   : > { %v3315_v8 = vpop.xlane.xlu0 %3314 }
0x111d   : > { %v3316_v9 = vmul.f32 0.0078125, %v3315_v8 }
0x111f   : > { %v3317_v10 = vsub.f32 %v3309_v5, %v3316_v9 }
0x1121   : > { %v3318_v11 = vmul.f32 %v3317_v10, %v3317_v10 }
0x1123   : > { %v3319_v12 = vsel %vm3312_vm4, %v3318_v11, 0.0 }
0x1124   : > { %3320 = vadd.xlane.f32.xlu0 %v3319_v12 }
0x11ad   : > { %v3321_v22 = vpop.xlane.xlu0 %3320 }
0x11ae   : > { %v3322_v24 = vmul.f32 0.0078125, %v3321_v22 }
0x11b0   : > { %v3323_v25 = vadd.f32 1e-05, %v3322_v24 }
0x11b2   : > { %4433 = vrsqrt.f32 %v3323_v25 }
0x11bf   : > { %v4434_v26 = vpop.eup %4433 }
0x11c0   : > { %v3325_v60 = vmul.f32 %v4434_v26, %v3317_v10 }
0x11c2   : > { %v3332_v32 = vmul.f32 %v3812_v27, %v3325_v60 }
0x11c4   : > { %v3339_v34 = vadd.f32 %v3813_v28, %v3332_v32 }
0x11c6   : > { %v3340_v1 = vpack.c.bf16 %v3339_v34, %v3339_v34 }
0x11c8   : > { %4101 = vmatmul.mubr.bf16.vlgmr.msra.gmra.mxu0 %v3340_v1 }
0x1288   : > { %v3446_v36 = vpop.f32.mrf.mxu0 }
0x1289   : > { %v3447_v37 = vadd.f32 %v3814_v35, %v3446_v36 }
0x128a   : > { %v4102_v38 = vpop.f32.mrf.mxu0 }
0x128b   : > { %3452 = vst [vmem:[%s5320_s10] sm:$0x3] %v3447_v37 }
0x128c   : > { %v3449_v39 = vpop.f32.mrf.mxu0 }
0x128e   : > { %v4103_v40 = vpop.f32.mrf.mxu0 }
0x128f PF: > { %s5321_s30 = sld [smem:[#allocation9_spill]]  ;;  %s5323_s3 = smov %s4519_s28 }
0x1290   : > { %s5322_s6 = sld [smem:[#allocation10_spill]]  ;;  %s5324_s28 = smov %s4523_s29 }
0x1295   : > { %p33_p7 = scmp.ge.s32.totalorder %s5321_s30, 4  }
0x1296   : > { %s5325_s29 = smov %s5322_s6 }
0x1297   :  { %35 = sbr.rel (!%p33_p7) target bundleno = 20 (0x14), region = 190 }
0x129c   :  { %3464 = vsyncpa [#allocation4], 1 }
0x129d   :  { %3466 = vsyncpa [#allocation4 + $0x1], 1 }
0x129e   :  { %3467 = vsyncpa [#allocation6], 1 }
0x129f   :  { %3469 = vsyncpa [#allocation6 + $0x1], 1 }

</bundles_post_ra>
